<compile_context>
chip_gen: v7x
topology: tpu7x:2x2x1
jax: 0.10.0
libtpu: 0.0.40
codegen_flags: <defaults>
</compile_context>

<pallas_src>
import math

import numpy as np
import jax
import jax.numpy as jnp
from jax.experimental import pallas as pl
from jax.experimental.pallas import tpu as pltpu

_LANE = 128
_SUBLANE = 8
_PALLAS_MIN_BYTES = 32 * 1024     # below this, use plain jnp (dispatch dominates)
_MAX_ROWS_SINGLE = 1024           # <= (1024,128) f32 = 512 KiB -> single full-array block
_MIN_ROW_TILE = 512               # 256 KiB f32 blocks for mid-size inputs
_MAX_ROW_TILE = 8192              # 4 MiB f32 blocks for large inputs
_TARGET_GRID_STEPS = 8            # ~8 steps so both v7x TCs can double-buffer


def _round_up(v: int, m: int) -> int:
    return ((v + m - 1) // m) * m


def _init_params_from_y(y_np: np.ndarray) -> np.ndarray:
    """Reproduce BiExpModel.__init__ parameter initialization (host-side)."""
    y_np = np.asarray(y_np, dtype=np.float64)
    if len(y_np) < 2:
        a1_init, a2_init, b1_init, b2_init, c_init = (
            0.0, 0.0, 1.0, 1.0, float(np.mean(y_np)) if len(y_np) > 0 else 0.0)
    else:
        turning_point = int(np.argmax(y_np))
        a1_init = y_np[turning_point] - y_np[0] if turning_point > 0 else 0.0
        a2_init = (y_np[turning_point] - y_np[-1]
                   if turning_point < len(y_np) - 1 else 0.0)
        diff_y = np.diff(y_np)
        slope1 = (diff_y[turning_point - 1]
                  if turning_point > 0 and turning_point <= len(diff_y) else 0.0)
        b1_init = -1.0 / (slope1 + 1e-06) if slope1 != -1e-06 else 1.0
        slope2 = diff_y[turning_point] if turning_point < len(diff_y) else 0.0
        b2_init = -1.0 / (slope2 + 1e-06) if slope2 != -1e-06 else 1.0
        c_init = float(y_np.min())
    b1_init = b1_init if np.isfinite(b1_init) else 1.0
    b2_init = b2_init if np.isfinite(b2_init) else 1.0
    return np.array([a1_init, a2_init, b1_init, b2_init, c_init],
                    dtype=np.float32)


def _biexp_kernel(params_ref, x_ref, o_ref):
    # params_ref: SMEM (5,) f32 -> [a1, a2, -b1, -b2, c]  (negation pre-packed)
    a1 = params_ref[0]
    a2 = params_ref[1]
    nb1 = params_ref[2]
    nb2 = params_ref[3]
    c = params_ref[4]
    x = x_ref[...].astype(jnp.float32)
    y = a1 * jnp.exp(nb1 * x) + a2 * jnp.exp(nb2 * x) + c
    o_ref[...] = y.astype(o_ref.dtype)


def _biexp_jnp(params: jax.Array, x: jax.Array) -> jax.Array:
    """Plain-XLA fallback (also the reference implementation)."""
    a1, a2, b1, b2, c = [params[i] for i in range(5)]
    xf = x.astype(jnp.float32)
    return (a1 * jnp.exp(-b1 * xf) + a2 * jnp.exp(-b2 * xf) + c).astype(x.dtype)


def biexp_forward(params: jax.Array, x: jax.Array) -> jax.Array:
    """a1*exp(-b1*x) + a2*exp(-b2*x) + c, elementwise, any x shape.

    `params` is the module's parameter vector [a1, a2, b1, b2, c] (float32).
    """
    orig_shape = x.shape
    orig_dtype = x.dtype
    n = int(math.prod(orig_shape)) if orig_shape else 1
    itemsize = jnp.dtype(orig_dtype).itemsize

    # Tiny inputs: dispatch + pad/slice around a custom call would dominate;
    # let XLA fuse the whole thing into one small elementwise kernel.
    if n * itemsize < _PALLAS_MIN_BYTES:
        return _biexp_jnp(params, x)

    # Pack [a1, a2, -b1, -b2, c] so the kernel skips per-tile negates.
    packed = (params.astype(jnp.float32)
              * jnp.asarray([1.0, 1.0, -1.0, -1.0, 1.0], dtype=jnp.float32))

    flat = x.reshape(-1)
    rows = pl.cdiv(n, _LANE)
    padded_n = rows * _LANE
    if padded_n != n:
        # Minimal pad: <= 127 elements, in x.dtype (no multi-tile over-padding).
        flat = jnp.pad(flat, (0, padded_n - n))
    slab = flat.reshape(rows, _LANE)

    if rows <= _MAX_ROWS_SINGLE:
        # Single block equal to the full array dims (no (8,128) divisibility
        # requirement, zero pipeline bookkeeping).
        row_tile = rows
        grid = (1,)
    else:
        # Aim for ~_TARGET_GRID_STEPS grid steps; clamp block size to
        # [_MIN_ROW_TILE, _MAX_ROW_TILE] rows. Pallas masks the ragged final
        # block, so rows are NOT rounded up to a row_tile multiple.
        row_tile = _round_up(pl.cdiv(rows, _TARGET_GRID_STEPS), 32)
        row_tile = max(_MIN_ROW_TILE, min(_MAX_ROW_TILE, row_tile))
        grid = (pl.cdiv(rows, row_tile),)

    # VMEM budget from actual buffer math: (in + out) x double-buffer, plus
    # headroom. Capped at 32 MiB so it is portable to v7x (64 MiB physical/TC).
    block_bytes = row_tile * _LANE * itemsize
    vmem_limit = min(32 * 1024 * 1024,
                     max(8 * 1024 * 1024, 4 * block_bytes + 2 * 1024 * 1024))

    cost = pl.CostEstimate(
        flops=6 * padded_n,
        transcendentals=2 * padded_n,
        bytes_accessed=2 * padded_n * itemsize,
    )

    out = pl.pallas_call(
        _biexp_kernel,
        out_shape=jax.ShapeDtypeStruct((rows, _LANE), orig_dtype),
        grid_spec=pl.GridSpec(
            grid=grid,
            in_specs=[
                pl.BlockSpec(memory_space=pltpu.MemorySpace.SMEM),    # params (5,)
                pl.BlockSpec((row_tile, _LANE), lambda i: (i, 0)),    # x slab
            ],
            out_specs=pl.BlockSpec((row_tile, _LANE), lambda i: (i, 0)),
        ),
        compiler_params=pltpu.CompilerParams(
            dimension_semantics=("parallel",),
            vmem_limit_bytes=vmem_limit,
        ),
        cost_estimate=cost,
    )(packed, slab)

    out_flat = out.reshape(-1)
    if padded_n != n:
        out_flat = out_flat[:n]
    return out_flat.reshape(orig_shape)


if __name__ == "__main__":
    key = jax.random.PRNGKey(0)

    # Reference curve `y` used only for parameter initialization (as in __init__).
    t = np.linspace(0.0, 4.0, 32, dtype=np.float32)
    y_np = 2.0 * np.exp(-0.5 * t) + 1.5 * np.exp(-2.0 * t) + 0.3
    params = jnp.asarray(_init_params_from_y(y_np))

    # 1) Small demo input (200 time points): exercises the tiny-input jnp path.
    x_small = jax.random.uniform(key, (200,), dtype=jnp.float32,
                                 minval=0.0, maxval=4.0)
    out_small = jax.block_until_ready(biexp_forward(params, x_small))
    np.testing.assert_allclose(np.asarray(out_small),
                               np.asarray(_biexp_jnp(params, x_small)),
                               rtol=1e-5, atol=1e-5)

    # 2) n % 128 == 0: no-pad fast path, single full-array block (grid=(1,)).
    x_mid = jnp.linspace(0.0, 4.0, 256 * 512, dtype=jnp.float32).reshape(256, 512)
    out_mid = jax.block_until_ready(biexp_forward(params, x_mid))
    np.testing.assert_allclose(np.asarray(out_mid),
                               np.asarray(_biexp_jnp(params, x_mid)),
                               rtol=1e-5, atol=1e-5)

    # 3) Larger input with a ragged tail: rows=2344 -> row_tile=512, grid=5,
    #    masked final block, minimal (32-element) wrapper pad.
    x_large = jnp.linspace(0.0, 4.0, 300_000, dtype=jnp.float32).reshape(4, 75_000)
    out_large = jax.block_until_ready(biexp_forward(params, x_large))
    np.testing.assert_allclose(np.asarray(out_large),
                               np.asarray(_biexp_jnp(params, x_large)),
                               rtol=1e-5, atol=1e-5)

    print("KERNEL_OK")
</pallas_src>

<mosaic_0001>
module attributes {stable_mosaic.version = 11 : i64} {
  func.func @_biexp_kernel(%arg0: i32, %arg1: memref<5xf32, #tpu.memory_space<smem>>, %arg2: memref<1024x128xf32, #tpu.memory_space<vmem>>, %arg3: memref<1024x128xf32, #tpu.memory_space<vmem>>) attributes {dimension_semantics = [#tpu.dimension_semantics<parallel>], iteration_bounds = array<i64: 1>, scalar_prefetch = 0 : i64, scratch_operands = 0 : i64, tpu.core_type = #tpu.core_type<tc>, window_params = [{transform_indices = @transform_0, window_bounds = array<i64: 5>}, {transform_indices = @transform_1, window_bounds = array<i64: 1024, 128>}, {transform_indices = @transform_2, window_bounds = array<i64: 1024, 128>}]} {
    %c0 = arith.constant 0 : index
    %0 = memref.load %arg1[%c0] : memref<5xf32, #tpu.memory_space<smem>>
    %c1 = arith.constant 1 : index
    %1 = memref.load %arg1[%c1] : memref<5xf32, #tpu.memory_space<smem>>
    %c2 = arith.constant 2 : index
    %2 = memref.load %arg1[%c2] : memref<5xf32, #tpu.memory_space<smem>>
    %c3 = arith.constant 3 : index
    %3 = memref.load %arg1[%c3] : memref<5xf32, #tpu.memory_space<smem>>
    %c4 = arith.constant 4 : index
    %4 = memref.load %arg1[%c4] : memref<5xf32, #tpu.memory_space<smem>>
    %c0_0 = arith.constant 0 : index
    %c0_1 = arith.constant 0 : index
    %5 = vector.load %arg2[%c0_0, %c0_1] : memref<1024x128xf32, #tpu.memory_space<vmem>>, vector<1024x128xf32>
    %6 = vector.broadcast %2 : f32 to vector<1024x128xf32>
    %7 = arith.mulf %6, %5 : vector<1024x128xf32>
    %8 = math.exp %7 : vector<1024x128xf32>
    %9 = vector.broadcast %0 : f32 to vector<1024x128xf32>
    %10 = arith.mulf %9, %8 : vector<1024x128xf32>
    %11 = vector.broadcast %3 : f32 to vector<1024x128xf32>
    %12 = arith.mulf %11, %5 : vector<1024x128xf32>
    %13 = math.exp %12 : vector<1024x128xf32>
    %14 = vector.broadcast %1 : f32 to vector<1024x128xf32>
    %15 = arith.mulf %14, %13 : vector<1024x128xf32>
    %16 = arith.addf %10, %15 : vector<1024x128xf32>
    %17 = vector.broadcast %4 : f32 to vector<1024x128xf32>
    %18 = arith.addf %16, %17 : vector<1024x128xf32>
    %c0_2 = arith.constant 0 : index
    %c0_3 = arith.constant 0 : index
    %19 = vector.load %arg3[%c0_2, %c0_3] : memref<1024x128xf32, #tpu.memory_space<vmem>>, vector<1024x128xf32>
    tpu.vector_store %arg3[%c0_2, %c0_3], %18 {strides = array<i32>} : memref<1024x128xf32, #tpu.memory_space<vmem>>, vector<1024x128xf32>,
    return
  }
  func.func @transform_0(%arg0: i32) -> i32 {
    %c0_i32 = arith.constant 0 : i32
    %c0_i32_0 = arith.constant 0 : i32
    return %c0_i32 : i32
  }
  func.func @transform_1(%arg0: i32) -> (i32, i32) {
    %c0_i32 = arith.constant 0 : i32
    %c0_i32_0 = arith.constant 0 : i32
    return %arg0, %c0_i32 : i32, i32
  }
  func.func @transform_2(%arg0: i32) -> (i32, i32) {
    %c0_i32 = arith.constant 0 : i32
    %c0_i32_0 = arith.constant 0 : i32
    return %arg0, %c0_i32 : i32, i32
  }
}

</mosaic_0001>

<bundles_post_ra>
// kernel: tpu_custom_call.1
= control target key start
LH: loop header
LB: loop body
LE: loop exit
PB: predicated region body
PF: predicated region fallthrough
CT: control target
= control target key end

     0   :  { %7 = vsyncpa [#allocation5], 0  ;;  %s2912_s0 = inlined_call_operand.hbm [shape: f32[5], index: 0, kind: input, shape index: {}]   ;;  %s2913_s1 = inlined_call_operand.hbm [shape: f32[1024,128], index: 1, kind: input, shape index: {}]   ;;  %s2914_s2 = inlined_call_operand.hbm [shape: f32[1024,128], index: 2, kind: output, shape index: {}]  }
   0x1   :  { %8 = vsyncpa [#allocation3], 0 }
   0x2   :  { %9 = vsyncpa [#allocation4], 0  ;;  %s2122_s11 = scalar_lea.hbm %s2912_s0, 16 }
   0x3   :  { %p2123_p0 = scmp.ne.s32.totalorder %s2912_s0, %s2122_s11  ;;  %p2126_p1 = scmp.lt.u32.totalorder %s2122_s11, %s2912_s0 }
   0x5   :  { %p2128_p2 = pnand %p2126_p1, %p2123_p0 }
   0x7   :  { %2131 = shalt.err (!%p2128_p2)
}
   0x8   :  { %s2182_s16 = smov [#allocation2]   ;;  %s2183_s19 = smov [#allocation6]  }
   0x9   :  { %17 = dma.hbm_to_smem %s2912_s0, 16, %s2182_s16, [#allocation5]  }
   0xa   :  { %s23_s20 = sshll.u32 %s2183_s19, 4  ;;  %s2132_s23 = scalar_lea.hbm %s2913_s1, 16384  ;;  %s24_s20 = int_to_ptr.vmem [resolvable:$true] %s23_s20 }
   0xb   :  { %p2133_p3 = scmp.ne.s32.totalorder %s2913_s1, %s2132_s23  ;;  %p2136_p4 = scmp.lt.u32.totalorder %s2132_s23, %s2913_s1 }
   0xd   :  { %p2138_p5 = pnand %p2136_p4, %p2133_p3 }
   0xf   :  { %2141 = shalt.err (!%p2138_p5)
}
  0x10   :  { %s2142_s28 = scalar_lea.vmem %s24_s20, 16384  ;;  %p2147_p7 = scmp.lt.s32.totalorder %s24_s20, %s24_s20 }
  0x11   :  { %p2143_p6 = scmp.ne.s32.totalorder %s24_s20, %s2142_s28  ;;  %p2148_p8 = scmp.lt.s32.totalorder %s2142_s28, %s2142_s28 }
  0x13   :  { %p2149_p9 = por %p2148_p8, %p2147_p7 }
  0x15   :  { %p2150_p10 = pnand %p2149_p9, %p2143_p6 }
  0x17   :  { %2153 = shalt.err (!%p2150_p10)
}
  0x18   :  { %s2184_s0 = smov 128   ;;  %s2185_s29 = smov 8  }
  0x19   :  { %29 = dma.hbm_to_vmem [thread:$0]  %s2913_s1, 16384, %s24_s20, [#allocation3], %s2184_s0, %s2184_s0, %s2185_s29  }
  0x1a   :  { %2176 = dma.done.wait [#allocation5], 16  }
  0x1b   :  { %2177 = vsyncadd [#allocation5], 4294967280 }
  0x1c   :  { %2178 = dma.done.wait [#allocation3], 16384  }
  0x1d   :  { %2179 = vsyncadd [#allocation3], 4294950912 }
  0x1e   :  { %36 = sfence }
  0x1f   :  { %s37_s4 = sld [smem:[#allocation2]]  ;;  %s1601_s5 = sld [smem:[#allocation2 + $0x1]]  ;;  %v42_v0 = vld [vmem:[#allocation6] sm:$0xff]  ;;  %v43_v1 = vld [vmem:[#allocation6 + $0x8] sm:$0xff]  ;;  %v44_v2 = vld [vmem:[#allocation6 + $0x10] sm:$0xff] }
  0x20   :  { %s1602_s6 = sld [smem:[#allocation2 + $0x2]]  ;;  %s1603_s7 = sld [smem:[#allocation2 + $0x3]]  ;;  %v45_v3 = vld [vmem:[#allocation6 + $0x18] sm:$0xff]  ;;  %v46_v12 = vld [vmem:[#allocation6 + $0x20] sm:$0xff]  ;;  %v47_v17 = vld [vmem:[#allocation6 + $0x28] sm:$0xff] }
  0x21   :  { %s1604_s8 = sld [smem:[#allocation2 + $0x4]]  ;;  %v48_v18 = vld [vmem:[#allocation6 + $0x30] sm:$0xff]  ;;  %v49_v30 = vld [vmem:[#allocation6 + $0x38] sm:$0xff]  ;;  %v50_v37 = vld [vmem:[#allocation6 + $0x40] sm:$0xff]  ;;  %s2186_s1 = smov [#allocation7]  }
  0x22   :  { %v51_v41 = vld [vmem:[#allocation6 + $0x48] sm:$0xff]  ;;  %v52_v45 = vld [vmem:[#allocation6 + $0x50] sm:$0xff]  ;;  %v53_v52 = vld [vmem:[#allocation6 + $0x58] sm:$0xff]  ;;  %s1588_s9 = sshll.u32 %s2186_s1, 4  ;;  %s1589_s9 = int_to_ptr.vmem [resolvable:$true] %s1588_s9 }
  0x23   :  { %v54_v56 = vld [vmem:[#allocation6 + $0x60] sm:$0xff]  ;;  %s2154_s10 = scalar_lea.vmem %s1589_s9, 16384  ;;  %p2159_p12 = scmp.lt.s32.totalorder %s1589_s9, %s1589_s9 }
  0x24   :  { %p2155_p11 = scmp.ne.s32.totalorder %s1589_s9, %s2154_s10  ;;  %p2160_p13 = scmp.lt.s32.totalorder %s2154_s10, %s2154_s10 }
  0x25   :  { %v2231_v5 = vstv %s37_s4  ;;  %v2235_v7 = vstv %s1601_s5 }
  0x26   :  { %v2229_v4 = vstv %s1602_s6  ;;  %v2233_v6 = vstv %s1603_s7  ;;  %p2161_p0 = por %p2160_p13, %p2159_p12 }
  0x27   :  { %v171_v8 = vmul.f32 %v2229_v4, %v42_v0  ;;  %v685_v9 = vmul.f32 %v2233_v6, %v42_v0  ;;  %v2239_v10 = vstv %s1604_s8  ;;  %v172_v11 = vmul.f32 %v2229_v4, %v43_v1 }
  0x28   :  { %v686_v13 = vmul.f32 %v2233_v6, %v43_v1  ;;  %v173_v14 = vmul.f32 %v2229_v4, %v44_v2  ;;  %v687_v15 = vmul.f32 %v2233_v6, %v44_v2  ;;  %v174_v16 = vmul.f32 %v2229_v4, %v45_v3  ;;  %p2162_p1 = pnand %p2161_p0, %p2155_p11 }
  0x29   :  { %v299_v19 = vmul.f32 1.442695, %v171_v8  ;;  %v813_v20 = vmul.f32 1.442695, %v685_v9  ;;  %v301_v21 = vmul.f32 1.442695, %v172_v11  ;;  %v688_v22 = vmul.f32 %v2233_v6, %v45_v3 }
  0x2a   :  { %v815_v23 = vmul.f32 1.442695, %v686_v13  ;;  %v303_v24 = vmul.f32 1.442695, %v173_v14  ;;  %v817_v25 = vmul.f32 1.442695, %v687_v15  ;;  %v175_v26 = vmul.f32 %v2229_v4, %v46_v12 }
  0x2b   :  { %1610 = vpow2.f32 %v299_v19  ;;  %v305_v27 = vmul.f32 1.442695, %v174_v16  ;;  %v819_v28 = vmul.f32 1.442695, %v688_v22  ;;  %v689_v29 = vmul.f32 %v2233_v6, %v46_v12  ;;  %v55_v3 = vld [vmem:[#allocation6 + $0x68] sm:$0xff]  ;;  %v56_v13 = vld [vmem:[#allocation6 + $0x70] sm:$0xff] }
  0x2c   :  { %1612 = vpow2.f32 %v813_v20  ;;  %v307_v31 = vmul.f32 1.442695, %v175_v26  ;;  %v176_v32 = vmul.f32 %v2229_v4, %v47_v17  ;;  %v690_v33 = vmul.f32 %v2233_v6, %v47_v17 }
  0x2d   :  { %1614 = vpow2.f32 %v301_v21  ;;  %v821_v34 = vmul.f32 1.442695, %v689_v29  ;;  %v177_v35 = vmul.f32 %v2229_v4, %v48_v18  ;;  %v691_v36 = vmul.f32 %v2233_v6, %v48_v18 }
  0x2e   :  { %1616 = vpow2.f32 %v815_v23  ;;  %v309_v38 = vmul.f32 1.442695, %v176_v32  ;;  %v823_v39 = vmul.f32 1.442695, %v690_v33  ;;  %v178_v40 = vmul.f32 %v2229_v4, %v49_v30 }
  0x2f   :  { %1618 = vpow2.f32 %v303_v24  ;;  %v311_v42 = vmul.f32 1.442695, %v177_v35  ;;  %v825_v43 = vmul.f32 1.442695, %v691_v36  ;;  %v692_v44 = vmul.f32 %v2233_v6, %v49_v30 }
  0x30   :  { %1620 = vpow2.f32 %v817_v25  ;;  %v313_v46 = vmul.f32 1.442695, %v178_v40  ;;  %v179_v47 = vmul.f32 %v2229_v4, %v50_v37  ;;  %v693_v48 = vmul.f32 %v2233_v6, %v50_v37 }
  0x31   :  { %1622 = vpow2.f32 %v305_v27  ;;  %v827_v49 = vmul.f32 1.442695, %v692_v44  ;;  %v180_v50 = vmul.f32 %v2229_v4, %v51_v41  ;;  %v694_v51 = vmul.f32 %v2233_v6, %v51_v41 }
  0x32   :  { %1624 = vpow2.f32 %v819_v28  ;;  %v315_v53 = vmul.f32 1.442695, %v179_v47  ;;  %v829_v54 = vmul.f32 1.442695, %v693_v48  ;;  %v181_v55 = vmul.f32 %v2229_v4, %v52_v45 }
  0x33   :  { %1626 = vpow2.f32 %v307_v31  ;;  %v317_v57 = vmul.f32 1.442695, %v180_v50  ;;  %v831_v58 = vmul.f32 1.442695, %v694_v51  ;;  %v695_v59 = vmul.f32 %v2233_v6, %v52_v45  ;;  %v58_v51 = vld [vmem:[#allocation6 + $0x80] sm:$0xff] }
  0x34   :  { %1628 = vpow2.f32 %v821_v34  ;;  %v319_v60 = vmul.f32 1.442695, %v181_v55  ;;  %v182_v61 = vmul.f32 %v2229_v4, %v53_v52  ;;  %v696_v62 = vmul.f32 %v2233_v6, %v53_v52  ;;  %v57_v34 = vld [vmem:[#allocation6 + $0x78] sm:$0xff] }
  0x35   :  { %v1611_v63 = vpop.eup %1610  ;;  %1630 = vpow2.f32 %v309_v38  ;;  %v833_v0 = vmul.f32 1.442695, %v695_v59  ;;  %v183_v1 = vmul.f32 %v2229_v4, %v54_v56  ;;  %v697_v2 = vmul.f32 %v2233_v6, %v54_v56 }
  0x36   :  { %v1613_v8 = vpop.eup %1612  ;;  %v556_v9 = vmul.f32 %v1611_v63, %v2231_v5  ;;  %1632 = vpow2.f32 %v823_v39  ;;  %v321_v11 = vmul.f32 1.442695, %v182_v61  ;;  %v2266_v12 = vmul.f32 1.442695, %v696_v62 }
  0x37   :  { %v1615_v14 = vpop.eup %1614  ;;  %v1070_v15 = vmul.f32 %v1613_v8, %v2235_v7  ;;  %1634 = vpow2.f32 %v311_v42  ;;  %v2269_v16 = vmul.f32 1.442695, %v183_v1  ;;  %v2271_v17 = vmul.f32 1.442695, %v697_v2  ;;  %v59_v8 = vld [vmem:[#allocation6 + $0x88] sm:$0xff] }
  0x38   :  { %v1617_v18 = vpop.eup %1616  ;;  %v557_v19 = vmul.f32 %v1615_v14, %v2231_v5  ;;  %1636 = vpow2.f32 %v825_v43  ;;  %v184_v20 = vmul.f32 %v2229_v4, %v55_v3  ;;  %v698_v21 = vmul.f32 %v2233_v6, %v55_v3 }
  0x39   :  { %v1619_v22 = vpop.eup %1618  ;;  %v1198_v23 = vadd.f32 %v1070_v15, %v556_v9  ;;  %v1071_v24 = vmul.f32 %v1617_v18, %v2235_v7  ;;  %1638 = vpow2.f32 %v313_v46  ;;  %v185_v25 = vmul.f32 %v2229_v4, %v56_v13 }
  0x3a   :  { %v1621_v26 = vpop.eup %1620  ;;  %v558_v27 = vmul.f32 %v1619_v22, %v2231_v5  ;;  %1640 = vpow2.f32 %v827_v49  ;;  %v2279_v28 = vmul.f32 1.442695, %v184_v20  ;;  %v2281_v29 = vmul.f32 1.442695, %v698_v21 }
  0x3b   :  { %v1623_v30 = vpop.eup %1622  ;;  %v1327_v31 = vadd.f32 %v2239_v10, %v1198_v23  ;;  %v1199_v32 = vadd.f32 %v1071_v24, %v557_v19  ;;  %v1072_v33 = vmul.f32 %v1621_v26, %v2235_v7  ;;  %1642 = vpow2.f32 %v315_v53  ;;  %v60_v26 = vld [vmem:[#allocation6 + $0x90] sm:$0xff] }
  0x3c   :  { %v1625_v35 = vpop.eup %1624  ;;  %v559_v36 = vmul.f32 %v1623_v30, %v2231_v5  ;;  %1644 = vpow2.f32 %v829_v54  ;;  %v2286_v37 = vmul.f32 1.442695, %v185_v25  ;;  %v699_v38 = vmul.f32 %v2233_v6, %v56_v13 }
  0x3d   :  { %v1627_v39 = vpop.eup %1626  ;;  %1455 = vst [vmem:[#allocation7] sm:$0xff] %v1327_v31  ;;  %v1328_v40 = vadd.f32 %v2239_v10, %v1199_v32  ;;  %v1200_v41 = vadd.f32 %v1072_v33, %v558_v27  ;;  %v1073_v42 = vmul.f32 %v1625_v35, %v2235_v7  ;;  %1646 = vpow2.f32 %v317_v57 }
  0x3e   :  { %v1629_v43 = vpop.eup %1628  ;;  %v560_v44 = vmul.f32 %v1627_v39, %v2231_v5  ;;  %1648 = vpow2.f32 %v831_v58  ;;  %v841_v45 = vmul.f32 1.442695, %v699_v38  ;;  %v186_v46 = vmul.f32 %v2229_v4, %v57_v34 }
  0x3f   :  { %v1631_v47 = vpop.eup %1630  ;;  %1456 = vst [vmem:[#allocation7 + $0x8] sm:$0xff] %v1328_v40  ;;  %v1329_v48 = vadd.f32 %v2239_v10, %v1200_v41  ;;  %v1201_v49 = vadd.f32 %v1073_v42, %v559_v36  ;;  %v1074_v50 = vmul.f32 %v1629_v43, %v2235_v7  ;;  %1650 = vpow2.f32 %v319_v60  ;;  %v61_v43 = vld [vmem:[#allocation6 + $0x98] sm:$0xff] }
  0x40   :  { %v1633_v52 = vpop.eup %1632  ;;  %v561_v53 = vmul.f32 %v1631_v47, %v2231_v5  ;;  %1652 = vpow2.f32 %v833_v0  ;;  %v329_v54 = vmul.f32 1.442695, %v186_v46  ;;  %v700_v55 = vmul.f32 %v2233_v6, %v57_v34 }
  0x41   :  { %v1635_v56 = vpop.eup %1634  ;;  %1457 = vst [vmem:[#allocation7 + $0x10] sm:$0xff] %v1329_v48  ;;  %v1330_v57 = vadd.f32 %v2239_v10, %v1201_v49  ;;  %v1202_v58 = vadd.f32 %v1074_v50, %v560_v44  ;;  %v1075_v59 = vmul.f32 %v1633_v52, %v2235_v7  ;;  %1654 = vpow2.f32 %v321_v11 }
  0x42   :  { %v1637_v61 = vpop.eup %1636  ;;  %v562_v62 = vmul.f32 %v1635_v56, %v2231_v5  ;;  %1656 = vpow2.f32 %v2266_v12  ;;  %v843_v60 = vmul.f32 1.442695, %v700_v55  ;;  %v187_v63 = vmul.f32 %v2229_v4, %v58_v51  ;;  %v62_v56 = vld [vmem:[#allocation6 + $0xa0] sm:$0xff] }
  0x43   :  { %v1639_v0 = vpop.eup %1638  ;;  %1458 = vst [vmem:[#allocation7 + $0x18] sm:$0xff] %v1330_v57  ;;  %v1331_v1 = vadd.f32 %v2239_v10, %v1202_v58  ;;  %v1203_v2 = vadd.f32 %v1075_v59, %v561_v53  ;;  %v1076_v3 = vmul.f32 %v1637_v61, %v2235_v7  ;;  %1658 = vpow2.f32 %v2269_v16 }
  0x44   :  { %v1641_v9 = vpop.eup %1640  ;;  %v563_v11 = vmul.f32 %v1639_v0, %v2231_v5  ;;  %1660 = vpow2.f32 %v2271_v17  ;;  %v331_v13 = vmul.f32 1.442695, %v187_v63  ;;  %v701_v12 = vmul.f32 %v2233_v6, %v58_v51 }
  0x45   :  { %v1643_v14 = vpop.eup %1642  ;;  %1459 = vst [vmem:[#allocation7 + $0x20] sm:$0xff] %v1331_v1  ;;  %v1332_v15 = vadd.f32 %v2239_v10, %v1203_v2  ;;  %v1204_v18 = vadd.f32 %v1076_v3, %v562_v62  ;;  %v1077_v19 = vmul.f32 %v1641_v9, %v2235_v7  ;;  %1662 = vpow2.f32 %v2279_v28 }
  0x46   :  { %v1645_v20 = vpop.eup %1644  ;;  %v564_v16 = vmul.f32 %v1643_v14, %v2231_v5  ;;  %1664 = vpow2.f32 %v2281_v29  ;;  %v845_v21 = vmul.f32 1.442695, %v701_v12  ;;  %v188_v17 = vmul.f32 %v2229_v4, %v59_v8 }
  0x47   :  { %v1647_v22 = vpop.eup %1646  ;;  %1460 = vst [vmem:[#allocation7 + $0x28] sm:$0xff] %v1332_v15  ;;  %v1333_v23 = vadd.f32 %v2239_v10, %v1204_v18  ;;  %v1205_v24 = vadd.f32 %v1077_v19, %v563_v11  ;;  %v1078_v25 = vmul.f32 %v1645_v20, %v2235_v7  ;;  %1666 = vpow2.f32 %v2286_v37  ;;  %v63_v11 = vld [vmem:[#allocation6 + $0xa8] sm:$0xff] }
  0x48   :  { %v1649_v27 = vpop.eup %1648  ;;  %v565_v28 = vmul.f32 %v1647_v22, %v2231_v5  ;;  %1668 = vpow2.f32 %v841_v45  ;;  %v333_v30 = vmul.f32 1.442695, %v188_v17  ;;  %v702_v29 = vmul.f32 %v2233_v6, %v59_v8 }
  0x49   :  { %v1651_v31 = vpop.eup %1650  ;;  %1461 = vst [vmem:[#allocation7 + $0x30] sm:$0xff] %v1333_v23  ;;  %v1334_v32 = vadd.f32 %v2239_v10, %v1205_v24  ;;  %v1206_v33 = vadd.f32 %v1078_v25, %v564_v16  ;;  %v1079_v34 = vmul.f32 %v1649_v27, %v2235_v7  ;;  %1670 = vpow2.f32 %v329_v54  ;;  %v64_v25 = vld [vmem:[#allocation6 + $0xb0] sm:$0xff] }
  0x4a   :  { %v1653_v35 = vpop.eup %1652  ;;  %v566_v36 = vmul.f32 %v1651_v31, %v2231_v5  ;;  %1672 = vpow2.f32 %v843_v60  ;;  %v847_v37 = vmul.f32 1.442695, %v702_v29  ;;  %v189_v38 = vmul.f32 %v2229_v4, %v60_v26 }
  0x4b   :  { %v1655_v39 = vpop.eup %1654  ;;  %1462 = vst [vmem:[#allocation7 + $0x38] sm:$0xff] %v1334_v32  ;;  %v1335_v40 = vadd.f32 %v2239_v10, %v1206_v33  ;;  %v1207_v41 = vadd.f32 %v1079_v34, %v565_v28  ;;  %v1080_v42 = vmul.f32 %v1653_v35, %v2235_v7  ;;  %1674 = vpow2.f32 %v331_v13 }
  0x4c   :  { %v1657_v44 = vpop.eup %1656  ;;  %v567_v45 = vmul.f32 %v1655_v39, %v2231_v5  ;;  %1676 = vpow2.f32 %v845_v21  ;;  %v335_v46 = vmul.f32 1.442695, %v189_v38  ;;  %v703_v47 = vmul.f32 %v2233_v6, %v60_v26  ;;  %v65_v39 = vld [vmem:[#allocation6 + $0xb8] sm:$0xff] }
  0x4d   :  { %v1659_v48 = vpop.eup %1658  ;;  %1463 = vst [vmem:[#allocation7 + $0x40] sm:$0xff] %v1335_v40  ;;  %v1336_v49 = vadd.f32 %v2239_v10, %v1207_v41  ;;  %v1208_v50 = vadd.f32 %v1080_v42, %v566_v36  ;;  %v1081_v51 = vmul.f32 %v1657_v44, %v2235_v7  ;;  %1678 = vpow2.f32 %v333_v30 }
  0x4e   :  { %v1661_v52 = vpop.eup %1660  ;;  %v568_v53 = vmul.f32 %v1659_v48, %v2231_v5  ;;  %1680 = vpow2.f32 %v847_v37  ;;  %v849_v54 = vmul.f32 1.442695, %v703_v47  ;;  %v190_v55 = vmul.f32 %v2229_v4, %v61_v43 }
  0x4f   :  { %v1663_v57 = vpop.eup %1662  ;;  %1464 = vst [vmem:[#allocation7 + $0x48] sm:$0xff] %v1336_v49  ;;  %v1337_v58 = vadd.f32 %v2239_v10, %v1208_v50  ;;  %v1209_v59 = vadd.f32 %v1081_v51, %v567_v45  ;;  %v1082_v61 = vmul.f32 %v1661_v52, %v2235_v7  ;;  %1682 = vpow2.f32 %v335_v46  ;;  %v66_v49 = vld [vmem:[#allocation6 + $0xc0] sm:$0xff] }
  0x50   :  { %v1665_v62 = vpop.eup %1664  ;;  %v569_v60 = vmul.f32 %v1663_v57, %v2231_v5  ;;  %1684 = vpow2.f32 %v849_v54  ;;  %v337_v63 = vmul.f32 1.442695, %v190_v55  ;;  %v704_v0 = vmul.f32 %v2233_v6, %v61_v43  ;;  %v67_v57 = vld [vmem:[#allocation6 + $0xc8] sm:$0xff] }
  0x51   :  { %v1667_v1 = vpop.eup %1666  ;;  %1465 = vst [vmem:[#allocation7 + $0x50] sm:$0xff] %v1337_v58  ;;  %v1338_v2 = vadd.f32 %v2239_v10, %v1209_v59  ;;  %v1210_v3 = vadd.f32 %v1082_v61, %v568_v53  ;;  %v1083_v8 = vmul.f32 %v1665_v62, %v2235_v7  ;;  %v191_v9 = vmul.f32 %v2229_v4, %v62_v56 }
  0x52   :  { %v1669_v13 = vpop.eup %1668  ;;  %v570_v12 = vmul.f32 %v1667_v1, %v2231_v5  ;;  %1686 = vpow2.f32 %v337_v63  ;;  %v851_v14 = vmul.f32 1.442695, %v704_v0  ;;  %v705_v15 = vmul.f32 %v2233_v6, %v62_v56 }
  0x53   :  { %v1671_v18 = vpop.eup %1670  ;;  %1466 = vst [vmem:[#allocation7 + $0x58] sm:$0xff] %v1338_v2  ;;  %v1339_v19 = vadd.f32 %v2239_v10, %v1210_v3  ;;  %v1211_v20 = vadd.f32 %v1083_v8, %v569_v60  ;;  %v1084_v16 = vmul.f32 %v1669_v13, %v2235_v7  ;;  %v339_v21 = vmul.f32 1.442695, %v191_v9  ;;  %v68_v2 = vld [vmem:[#allocation6 + $0xd0] sm:$0xff] }
  0x54   :  { %v1673_v17 = vpop.eup %1672  ;;  %v571_v22 = vmul.f32 %v1671_v18, %v2231_v5  ;;  %1688 = vpow2.f32 %v851_v14  ;;  %v853_v23 = vmul.f32 1.442695, %v705_v15  ;;  %v192_v24 = vmul.f32 %v2229_v4, %v63_v11 }
  0x55   :  { %v1675_v26 = vpop.eup %1674  ;;  %1467 = vst [vmem:[#allocation7 + $0x60] sm:$0xff] %v1339_v19  ;;  %v1340_v27 = vadd.f32 %v2239_v10, %v1211_v20  ;;  %v1212_v28 = vadd.f32 %v1084_v16, %v570_v12  ;;  %v1085_v30 = vmul.f32 %v1673_v17, %v2235_v7  ;;  %1690 = vpow2.f32 %v339_v21  ;;  %v69_v19 = vld [vmem:[#allocation6 + $0xd8] sm:$0xff] }
  0x56   :  { %v1677_v29 = vpop.eup %1676  ;;  %v572_v31 = vmul.f32 %v1675_v26, %v2231_v5  ;;  %1692 = vpow2.f32 %v853_v23  ;;  %v341_v32 = vmul.f32 1.442695, %v192_v24  ;;  %v706_v33 = vmul.f32 %v2233_v6, %v63_v11 }
  0x57   :  { %v1679_v34 = vpop.eup %1678  ;;  %1468 = vst [vmem:[#allocation7 + $0x68] sm:$0xff] %v1340_v27  ;;  %v1341_v35 = vadd.f32 %v2239_v10, %v1212_v28  ;;  %v1213_v36 = vadd.f32 %v1085_v30, %v571_v22  ;;  %v1086_v37 = vmul.f32 %v1677_v29, %v2235_v7  ;;  %v193_v38 = vmul.f32 %v2229_v4, %v64_v25  ;;  %v70_v30 = vld [vmem:[#allocation6 + $0xe0] sm:$0xff] }
  0x58   :  { %v1681_v40 = vpop.eup %1680  ;;  %v573_v41 = vmul.f32 %v1679_v34, %v2231_v5  ;;  %1694 = vpow2.f32 %v341_v32  ;;  %v855_v42 = vmul.f32 1.442695, %v706_v33  ;;  %v707_v43 = vmul.f32 %v2233_v6, %v64_v25 }
  0x59   :  { %v1683_v44 = vpop.eup %1682  ;;  %1469 = vst [vmem:[#allocation7 + $0x70] sm:$0xff] %v1341_v35  ;;  %v1342_v45 = vadd.f32 %v2239_v10, %v1213_v36  ;;  %v1214_v46 = vadd.f32 %v1086_v37, %v572_v31  ;;  %v1087_v47 = vmul.f32 %v1681_v40, %v2235_v7  ;;  %v343_v48 = vmul.f32 1.442695, %v193_v38 }
  0x5a   :  { %v1685_v50 = vpop.eup %1684  ;;  %v574_v51 = vmul.f32 %v1683_v44, %v2231_v5  ;;  %1696 = vpow2.f32 %v855_v42  ;;  %v857_v52 = vmul.f32 1.442695, %v707_v43  ;;  %v194_v53 = vmul.f32 %v2229_v4, %v65_v39 }
  0x5b   :  { %1470 = vst [vmem:[#allocation7 + $0x78] sm:$0xff] %v1342_v45  ;;  %v1343_v54 = vadd.f32 %v2239_v10, %v1214_v46  ;;  %v1215_v55 = vadd.f32 %v1087_v47, %v573_v41  ;;  %v1088_v56 = vmul.f32 %v1685_v50, %v2235_v7  ;;  %1698 = vpow2.f32 %v343_v48  ;;  %v71_v41 = vld [vmem:[#allocation6 + $0xe8] sm:$0xff] }
  0x5c   :  { %v1687_v58 = vpop.eup %1686  ;;  %1700 = vpow2.f32 %v857_v52  ;;  %v345_v59 = vmul.f32 1.442695, %v194_v53  ;;  %v708_v61 = vmul.f32 %v2233_v6, %v65_v39  ;;  %v195_v62 = vmul.f32 %v2229_v4, %v66_v49 }
  0x5d   :  { %1471 = vst [vmem:[#allocation7 + $0x80] sm:$0xff] %v1343_v54  ;;  %v1344_v60 = vadd.f32 %v2239_v10, %v1215_v55  ;;  %v1216_v63 = vadd.f32 %v1088_v56, %v574_v51  ;;  %v575_v0 = vmul.f32 %v1687_v58, %v2231_v5  ;;  %v709_v1 = vmul.f32 %v2233_v6, %v66_v49  ;;  %v72_v49 = vld [vmem:[#allocation6 + $0xf0] sm:$0xff]  ;;  %v73_v54 = vld [vmem:[#allocation6 + $0xf8] sm:$0xff] }
  0x5e   :  { %v1689_v3 = vpop.eup %1688  ;;  %1702 = vpow2.f32 %v345_v59  ;;  %v859_v8 = vmul.f32 1.442695, %v708_v61  ;;  %v347_v9 = vmul.f32 1.442695, %v195_v62  ;;  %v196_v11 = vmul.f32 %v2229_v4, %v67_v57 }
  0x5f   :  { %v1691_v13 = vpop.eup %1690  ;;  %1472 = vst [vmem:[#allocation7 + $0x88] sm:$0xff] %v1344_v60  ;;  %v1345_v12 = vadd.f32 %v2239_v10, %v1216_v63  ;;  %v1089_v14 = vmul.f32 %v1689_v3, %v2235_v7  ;;  %v861_v15 = vmul.f32 1.442695, %v709_v1  ;;  %v710_v18 = vmul.f32 %v2233_v6, %v67_v57 }
  0x60   :  { %v1693_v20 = vpop.eup %1692  ;;  %v576_v16 = vmul.f32 %v1691_v13, %v2231_v5  ;;  %1704 = vpow2.f32 %v859_v8  ;;  %v349_v21 = vmul.f32 1.442695, %v196_v11  ;;  %v197_v17 = vmul.f32 %v2229_v4, %v68_v2 }
  0x61   :  { %1473 = vst [vmem:[#allocation7 + $0x90] sm:$0xff] %v1345_v12  ;;  %v1217_v22 = vadd.f32 %v1089_v14, %v575_v0  ;;  %v1090_v23 = vmul.f32 %v1693_v20, %v2235_v7  ;;  %1706 = vpow2.f32 %v347_v9  ;;  %v863_v24 = vmul.f32 1.442695, %v710_v18  ;;  %v74_v18 = vld [vmem:[#allocation6 + $0x100] sm:$0xff] }
  0x62   :  { %v1695_v25 = vpop.eup %1694  ;;  %1708 = vpow2.f32 %v861_v15  ;;  %v351_v26 = vmul.f32 1.442695, %v197_v17  ;;  %v711_v27 = vmul.f32 %v2233_v6, %v68_v2  ;;  %v198_v28 = vmul.f32 %v2229_v4, %v69_v19 }
  0x63   :  { %v1346_v29 = vadd.f32 %v2239_v10, %v1217_v22  ;;  %v1218_v31 = vadd.f32 %v1090_v23, %v576_v16  ;;  %v577_v32 = vmul.f32 %v1695_v25, %v2231_v5  ;;  %1710 = vpow2.f32 %v349_v21  ;;  %v75_v25 = vld [vmem:[#allocation6 + $0x108] sm:$0xff] }
  0x64   :  { %v1697_v33 = vpop.eup %1696  ;;  %1712 = vpow2.f32 %v863_v24  ;;  %v865_v34 = vmul.f32 1.442695, %v711_v27  ;;  %v353_v35 = vmul.f32 1.442695, %v198_v28  ;;  %v712_v36 = vmul.f32 %v2233_v6, %v69_v19 }
  0x65   :  { %v1699_v37 = vpop.eup %1698  ;;  %1474 = vst [vmem:[#allocation7 + $0x98] sm:$0xff] %v1346_v29  ;;  %v1347_v38 = vadd.f32 %v2239_v10, %v1218_v31  ;;  %v1091_v39 = vmul.f32 %v1697_v33, %v2235_v7  ;;  %1714 = vpow2.f32 %v351_v26  ;;  %v199_v40 = vmul.f32 %v2229_v4, %v70_v30 }
  0x66   :  { %v1701_v42 = vpop.eup %1700  ;;  %v578_v43 = vmul.f32 %v1699_v37, %v2231_v5  ;;  %1716 = vpow2.f32 %v865_v34  ;;  %v867_v44 = vmul.f32 1.442695, %v712_v36  ;;  %v713_v45 = vmul.f32 %v2233_v6, %v70_v30  ;;  %v76_v34 = vld [vmem:[#allocation6 + $0x110] sm:$0xff] }
  0x67   :  { %1475 = vst [vmem:[#allocation7 + $0xa0] sm:$0xff] %v1347_v38  ;;  %v1219_v46 = vadd.f32 %v1091_v39, %v577_v32  ;;  %v1092_v47 = vmul.f32 %v1701_v42, %v2235_v7  ;;  %1718 = vpow2.f32 %v353_v35  ;;  %v355_v48 = vmul.f32 1.442695, %v199_v40 }
  0x68   :  { %v1703_v50 = vpop.eup %1702  ;;  %1720 = vpow2.f32 %v867_v44  ;;  %v869_v51 = vmul.f32 1.442695, %v713_v45  ;;  %v200_v52 = vmul.f32 %v2229_v4, %v71_v41  ;;  %v714_v53 = vmul.f32 %v2233_v6, %v71_v41 }
  0x69   :  { %v1348_v55 = vadd.f32 %v2239_v10, %v1219_v46  ;;  %v1220_v56 = vadd.f32 %v1092_v47, %v578_v43  ;;  %v579_v57 = vmul.f32 %v1703_v50, %v2231_v5  ;;  %1722 = vpow2.f32 %v355_v48 }
  0x6a   :  { %v1705_v58 = vpop.eup %1704  ;;  %1724 = vpow2.f32 %v869_v51  ;;  %v357_v59 = vmul.f32 1.442695, %v200_v52  ;;  %v871_v61 = vmul.f32 1.442695, %v714_v53  ;;  %v201_v62 = vmul.f32 %v2229_v4, %v72_v49 }
  0x6b   :  { %v1707_v60 = vpop.eup %1706  ;;  %1476 = vst [vmem:[#allocation7 + $0xa8] sm:$0xff] %v1348_v55  ;;  %v1349_v63 = vadd.f32 %v2239_v10, %v1220_v56  ;;  %v1093_v0 = vmul.f32 %v1705_v58, %v2235_v7  ;;  %v715_v1 = vmul.f32 %v2233_v6, %v72_v49  ;;  %v202_v2 = vmul.f32 %v2229_v4, %v73_v54  ;;  %v77_v49 = vld [vmem:[#allocation6 + $0x118] sm:$0xff] }
  0x6c   :  { %v1709_v3 = vpop.eup %1708  ;;  %v580_v8 = vmul.f32 %v1707_v60, %v2231_v5  ;;  %1726 = vpow2.f32 %v357_v59  ;;  %v359_v9 = vmul.f32 1.442695, %v201_v62  ;;  %v716_v11 = vmul.f32 %v2233_v6, %v73_v54 }
  0x6d   :  { %v1711_v13 = vpop.eup %1710  ;;  %1477 = vst [vmem:[#allocation7 + $0xb0] sm:$0xff] %v1349_v63  ;;  %v1221_v12 = vadd.f32 %v1093_v0, %v579_v57  ;;  %v1094_v14 = vmul.f32 %v1709_v3, %v2235_v7  ;;  %1728 = vpow2.f32 %v871_v61  ;;  %v873_v15 = vmul.f32 1.442695, %v715_v1 }
  0x6e   :  { %v1713_v19 = vpop.eup %1712  ;;  %v581_v20 = vmul.f32 %v1711_v13, %v2231_v5  ;;  %1730 = vpow2.f32 %v359_v9  ;;  %v361_v16 = vmul.f32 1.442695, %v202_v2  ;;  %v875_v21 = vmul.f32 1.442695, %v716_v11  ;;  %v78_v2 = vld [vmem:[#allocation6 + $0x120] sm:$0xff] }
  0x6f   :  { %v1715_v17 = vpop.eup %1714  ;;  %v1350_v22 = vadd.f32 %v2239_v10, %v1221_v12  ;;  %v1222_v23 = vadd.f32 %v1094_v14, %v580_v8  ;;  %v1095_v24 = vmul.f32 %v1713_v19, %v2235_v7  ;;  %1732 = vpow2.f32 %v873_v15 }
  0x70   :  { %v1717_v26 = vpop.eup %1716  ;;  %v582_v27 = vmul.f32 %v1715_v17, %v2231_v5  ;;  %1734 = vpow2.f32 %v361_v16  ;;  %v203_v28 = vmul.f32 %v2229_v4, %v74_v18  ;;  %v717_v30 = vmul.f32 %v2233_v6, %v74_v18  ;;  %v79_v18 = vld [vmem:[#allocation6 + $0x128] sm:$0xff]  ;;  %v80_v17 = vld [vmem:[#allocation6 + $0x130] sm:$0xff] }
  0x71   :  { %v1719_v29 = vpop.eup %1718  ;;  %1478 = vst [vmem:[#allocation7 + $0xb8] sm:$0xff] %v1350_v22  ;;  %v1351_v31 = vadd.f32 %v2239_v10, %v1222_v23  ;;  %v1223_v32 = vadd.f32 %v1095_v24, %v581_v20  ;;  %v1096_v33 = vmul.f32 %v1717_v26, %v2235_v7  ;;  %1736 = vpow2.f32 %v875_v21 }
  0x72   :  { %v1721_v35 = vpop.eup %1720  ;;  %v583_v36 = vmul.f32 %v1719_v29, %v2231_v5  ;;  %v363_v37 = vmul.f32 1.442695, %v203_v28  ;;  %v877_v38 = vmul.f32 1.442695, %v717_v30  ;;  %v204_v39 = vmul.f32 %v2229_v4, %v75_v25 }
  0x73   :  { %v1723_v40 = vpop.eup %1722  ;;  %1479 = vst [vmem:[#allocation7 + $0xc0] sm:$0xff] %v1351_v31  ;;  %v1352_v41 = vadd.f32 %v2239_v10, %v1223_v32  ;;  %v1224_v42 = vadd.f32 %v1096_v33, %v582_v27  ;;  %v1097_v43 = vmul.f32 %v1721_v35, %v2235_v7  ;;  %v718_v44 = vmul.f32 %v2233_v6, %v75_v25 }
  0x74   :  { %v1725_v45 = vpop.eup %1724  ;;  %v584_v46 = vmul.f32 %v1723_v40, %v2231_v5  ;;  %1738 = vpow2.f32 %v363_v37  ;;  %v365_v47 = vmul.f32 1.442695, %v204_v39  ;;  %v205_v48 = vmul.f32 %v2229_v4, %v76_v34  ;;  %v82_v39 = vld [vmem:[#allocation6 + $0x140] sm:$0xff] }
  0x75   :  { %1480 = vst [vmem:[#allocation7 + $0xc8] sm:$0xff] %v1352_v41  ;;  %v1353_v50 = vadd.f32 %v2239_v10, %v1224_v42  ;;  %v1225_v51 = vadd.f32 %v1097_v43, %v583_v36  ;;  %v1098_v52 = vmul.f32 %v1725_v45, %v2235_v7  ;;  %1740 = vpow2.f32 %v877_v38 }
  0x76   :  { %v1727_v53 = vpop.eup %1726  ;;  %1742 = vpow2.f32 %v365_v47  ;;  %v879_v54 = vmul.f32 1.442695, %v718_v44  ;;  %v367_v55 = vmul.f32 1.442695, %v205_v48  ;;  %v719_v56 = vmul.f32 %v2233_v6, %v76_v34  ;;  %v81_v34 = vld [vmem:[#allocation6 + $0x138] sm:$0xff] }
  0x77   :  { %v1729_v57 = vpop.eup %1728  ;;  %1481 = vst [vmem:[#allocation7 + $0xd0] sm:$0xff] %v1353_v50  ;;  %v1354_v58 = vadd.f32 %v2239_v10, %v1225_v51  ;;  %v1226_v59 = vadd.f32 %v1098_v52, %v584_v46  ;;  %v585_v61 = vmul.f32 %v1727_v53, %v2231_v5  ;;  %v206_v62 = vmul.f32 %v2229_v4, %v77_v49 }
  0x78   :  { %v1731_v60 = vpop.eup %1730  ;;  %v1099_v63 = vmul.f32 %v1729_v57, %v2235_v7  ;;  %1744 = vpow2.f32 %v879_v54  ;;  %v881_v0 = vmul.f32 1.442695, %v719_v56  ;;  %v720_v1 = vmul.f32 %v2233_v6, %v77_v49 }
  0x79   :  { %v1733_v3 = vpop.eup %1732  ;;  %1482 = vst [vmem:[#allocation7 + $0xd8] sm:$0xff] %v1354_v58  ;;  %v1355_v8 = vadd.f32 %v2239_v10, %v1226_v59  ;;  %v586_v9 = vmul.f32 %v1731_v60, %v2231_v5  ;;  %1746 = vpow2.f32 %v367_v55  ;;  %v369_v11 = vmul.f32 1.442695, %v206_v62  ;;  %v83_v55 = vld [vmem:[#allocation6 + $0x148] sm:$0xff] }
  0x7a   :  { %v1735_v13 = vpop.eup %1734  ;;  %v1227_v12 = vadd.f32 %v1099_v63, %v585_v61  ;;  %v1100_v14 = vmul.f32 %v1733_v3, %v2235_v7  ;;  %1748 = vpow2.f32 %v881_v0  ;;  %v883_v15 = vmul.f32 1.442695, %v720_v1  ;;  %v84_v0 = vld [vmem:[#allocation6 + $0x150] sm:$0xff] }
  0x7b   :  { %v1737_v19 = vpop.eup %1736  ;;  %1483 = vst [vmem:[#allocation7 + $0xe0] sm:$0xff] %v1355_v8  ;;  %v587_v20 = vmul.f32 %v1735_v13, %v2231_v5  ;;  %1750 = vpow2.f32 %v369_v11  ;;  %v207_v16 = vmul.f32 %v2229_v4, %v78_v2  ;;  %v721_v21 = vmul.f32 %v2233_v6, %v78_v2 }
  0x7c   :  { %v1356_v22 = vadd.f32 %v2239_v10, %v1227_v12  ;;  %v1228_v23 = vadd.f32 %v1100_v14, %v586_v9  ;;  %v1101_v24 = vmul.f32 %v1737_v19, %v2235_v7  ;;  %1752 = vpow2.f32 %v883_v15  ;;  %v85_v9 = vld [vmem:[#allocation6 + $0x158] sm:$0xff] }
  0x7d   :  { %v371_v25 = vmul.f32 1.442695, %v207_v16  ;;  %v885_v26 = vmul.f32 1.442695, %v721_v21  ;;  %v208_v27 = vmul.f32 %v2229_v4, %v79_v18  ;;  %v722_v28 = vmul.f32 %v2233_v6, %v79_v18 }
  0x7e   :  { %v1739_v30 = vpop.eup %1738  ;;  %1484 = vst [vmem:[#allocation7 + $0xe8] sm:$0xff] %v1356_v22  ;;  %v1357_v29 = vadd.f32 %v2239_v10, %v1228_v23  ;;  %v1229_v31 = vadd.f32 %v1101_v24, %v587_v20  ;;  %v209_v32 = vmul.f32 %v2229_v4, %v80_v17  ;;  %v723_v33 = vmul.f32 %v2233_v6, %v80_v17  ;;  %v86_v22 = vld [vmem:[#allocation6 + $0x160] sm:$0xff] }
  0x7f   :  { %v1741_v35 = vpop.eup %1740  ;;  %v588_v36 = vmul.f32 %v1739_v30, %v2231_v5  ;;  %1754 = vpow2.f32 %v371_v25  ;;  %v373_v37 = vmul.f32 1.442695, %v208_v27  ;;  %v887_v38 = vmul.f32 1.442695, %v722_v28 }
  0x80   :  { %v1743_v40 = vpop.eup %1742  ;;  %1485 = vst [vmem:[#allocation7 + $0xf0] sm:$0xff] %v1357_v29  ;;  %v1358_v41 = vadd.f32 %v2239_v10, %v1229_v31  ;;  %v1102_v42 = vmul.f32 %v1741_v35, %v2235_v7  ;;  %1756 = vpow2.f32 %v885_v26  ;;  %v375_v43 = vmul.f32 1.442695, %v209_v32 }
  0x81   :  { %v589_v44 = vmul.f32 %v1743_v40, %v2231_v5  ;;  %1758 = vpow2.f32 %v373_v37  ;;  %v889_v45 = vmul.f32 1.442695, %v723_v33  ;;  %v210_v46 = vmul.f32 %v2229_v4, %v81_v34  ;;  %v87_v40 = vld [vmem:[#allocation6 + $0x168] sm:$0xff] }
  0x82   :  { %v1745_v47 = vpop.eup %1744  ;;  %1486 = vst [vmem:[#allocation7 + $0xf8] sm:$0xff] %v1358_v41  ;;  %v1230_v48 = vadd.f32 %v1102_v42, %v588_v36  ;;  %1760 = vpow2.f32 %v887_v38  ;;  %v724_v49 = vmul.f32 %v2233_v6, %v81_v34  ;;  %v211_v50 = vmul.f32 %v2229_v4, %v82_v39 }
  0x83   :  { %v1747_v51 = vpop.eup %1746  ;;  %v1103_v52 = vmul.f32 %v1745_v47, %v2235_v7  ;;  %1762 = vpow2.f32 %v375_v43  ;;  %v377_v53 = vmul.f32 1.442695, %v210_v46  ;;  %v725_v54 = vmul.f32 %v2233_v6, %v82_v39 }
  0x84   :  { %v1749_v56 = vpop.eup %1748  ;;  %v1359_v57 = vadd.f32 %v2239_v10, %v1230_v48  ;;  %v590_v58 = vmul.f32 %v1747_v51, %v2231_v5  ;;  %1764 = vpow2.f32 %v889_v45  ;;  %v891_v59 = vmul.f32 1.442695, %v724_v49 }
  0x85   :  { %v1751_v61 = vpop.eup %1750  ;;  %v1231_v62 = vadd.f32 %v1103_v52, %v589_v44  ;;  %v1104_v60 = vmul.f32 %v1749_v56, %v2235_v7  ;;  %1766 = vpow2.f32 %v377_v53  ;;  %v379_v63 = vmul.f32 1.442695, %v211_v50  ;;  %v88_v53 = vld [vmem:[#allocation6 + $0x170] sm:$0xff] }
  0x86   :  { %v1753_v1 = vpop.eup %1752  ;;  %1487 = vst [vmem:[#allocation7 + $0x100] sm:$0xff] %v1359_v57  ;;  %v591_v2 = vmul.f32 %v1751_v61, %v2231_v5  ;;  %1768 = vpow2.f32 %v891_v59  ;;  %v893_v3 = vmul.f32 1.442695, %v725_v54  ;;  %v212_v8 = vmul.f32 %v2229_v4, %v83_v55 }
  0x87   :  { %v1360_v11 = vadd.f32 %v2239_v10, %v1231_v62  ;;  %v1232_v13 = vadd.f32 %v1104_v60, %v590_v58  ;;  %v1105_v12 = vmul.f32 %v1753_v1, %v2235_v7  ;;  %1770 = vpow2.f32 %v379_v63  ;;  %v89_v58 = vld [vmem:[#allocation6 + $0x178] sm:$0xff] }
  0x88   :  { %1772 = vpow2.f32 %v893_v3  ;;  %v381_v14 = vmul.f32 1.442695, %v212_v8  ;;  %v726_v15 = vmul.f32 %v2233_v6, %v83_v55  ;;  %v213_v18 = vmul.f32 %v2229_v4, %v84_v0 }
  0x89   :  { %v1755_v19 = vpop.eup %1754  ;;  %1488 = vst [vmem:[#allocation7 + $0x108] sm:$0xff] %v1360_v11  ;;  %v1361_v20 = vadd.f32 %v2239_v10, %v1232_v13  ;;  %v1233_v16 = vadd.f32 %v1105_v12, %v591_v2  ;;  %v727_v21 = vmul.f32 %v2233_v6, %v84_v0  ;;  %v214_v17 = vmul.f32 %v2229_v4, %v85_v9  ;;  %v90_v13 = vld [vmem:[#allocation6 + $0x180] sm:$0xff] }
  0x8a   :  { %v1757_v23 = vpop.eup %1756  ;;  %v592_v24 = vmul.f32 %v1755_v19, %v2231_v5  ;;  %1774 = vpow2.f32 %v381_v14  ;;  %v895_v25 = vmul.f32 1.442695, %v726_v15  ;;  %v383_v26 = vmul.f32 1.442695, %v213_v18 }
  0x8b   :  { %v1759_v27 = vpop.eup %1758  ;;  %1489 = vst [vmem:[#allocation7 + $0x110] sm:$0xff] %v1361_v20  ;;  %v1362_v28 = vadd.f32 %v2239_v10, %v1233_v16  ;;  %v1106_v30 = vmul.f32 %v1757_v23, %v2235_v7  ;;  %v897_v29 = vmul.f32 1.442695, %v727_v21  ;;  %v385_v31 = vmul.f32 1.442695, %v214_v17 }
  0x8c   :  { %v1761_v32 = vpop.eup %1760  ;;  %v593_v33 = vmul.f32 %v1759_v27, %v2231_v5  ;;  %1776 = vpow2.f32 %v895_v25  ;;  %v728_v34 = vmul.f32 %v2233_v6, %v85_v9  ;;  %v215_v35 = vmul.f32 %v2229_v4, %v86_v22  ;;  %v91_v25 = vld [vmem:[#allocation6 + $0x188] sm:$0xff] }
  0x8d   :  { %v1763_v36 = vpop.eup %1762  ;;  %1490 = vst [vmem:[#allocation7 + $0x118] sm:$0xff] %v1362_v28  ;;  %v1234_v37 = vadd.f32 %v1106_v30, %v592_v24  ;;  %v1107_v38 = vmul.f32 %v1761_v32, %v2235_v7  ;;  %1778 = vpow2.f32 %v383_v26  ;;  %v729_v39 = vmul.f32 %v2233_v6, %v86_v22 }
  0x8e   :  { %v1765_v41 = vpop.eup %1764  ;;  %v594_v42 = vmul.f32 %v1763_v36, %v2231_v5  ;;  %1780 = vpow2.f32 %v897_v29  ;;  %v899_v43 = vmul.f32 1.442695, %v728_v34  ;;  %v387_v44 = vmul.f32 1.442695, %v215_v35 }
  0x8f   :  { %v1767_v45 = vpop.eup %1766  ;;  %v1363_v46 = vadd.f32 %v2239_v10, %v1234_v37  ;;  %v1235_v47 = vadd.f32 %v1107_v38, %v593_v33  ;;  %v1108_v48 = vmul.f32 %v1765_v41, %v2235_v7  ;;  %1782 = vpow2.f32 %v385_v31  ;;  %v92_v38 = vld [vmem:[#allocation6 + $0x190] sm:$0xff] }
  0x90   :  { %v1769_v49 = vpop.eup %1768  ;;  %v595_v50 = vmul.f32 %v1767_v45, %v2231_v5  ;;  %1784 = vpow2.f32 %v899_v43  ;;  %v901_v51 = vmul.f32 1.442695, %v729_v39  ;;  %v216_v52 = vmul.f32 %v2229_v4, %v87_v40  ;;  %v93_v43 = vld [vmem:[#allocation6 + $0x198] sm:$0xff] }
  0x91   :  { %v1771_v54 = vpop.eup %1770  ;;  %1491 = vst [vmem:[#allocation7 + $0x120] sm:$0xff] %v1363_v46  ;;  %v1364_v55 = vadd.f32 %v2239_v10, %v1235_v47  ;;  %v1236_v56 = vadd.f32 %v1108_v48, %v594_v42  ;;  %v1109_v57 = vmul.f32 %v1769_v49, %v2235_v7  ;;  %1786 = vpow2.f32 %v387_v44 }
  0x92   :  { %v1773_v59 = vpop.eup %1772  ;;  %v596_v61 = vmul.f32 %v1771_v54, %v2231_v5  ;;  %1788 = vpow2.f32 %v901_v51  ;;  %v389_v62 = vmul.f32 1.442695, %v216_v52  ;;  %v730_v60 = vmul.f32 %v2233_v6, %v87_v40 }
  0x93   :  { %1492 = vst [vmem:[#allocation7 + $0x128] sm:$0xff] %v1364_v55  ;;  %v1365_v63 = vadd.f32 %v2239_v10, %v1236_v56  ;;  %v1237_v0 = vadd.f32 %v1109_v57, %v595_v50  ;;  %v1110_v1 = vmul.f32 %v1773_v59, %v2235_v7  ;;  %v217_v2 = vmul.f32 %v2229_v4, %v88_v53  ;;  %v94_v56 = vld [vmem:[#allocation6 + $0x1a0] sm:$0xff] }
  0x94   :  { %v1775_v3 = vpop.eup %1774  ;;  %1790 = vpow2.f32 %v389_v62  ;;  %v903_v8 = vmul.f32 1.442695, %v730_v60  ;;  %v731_v9 = vmul.f32 %v2233_v6, %v88_v53  ;;  %v218_v11 = vmul.f32 %v2229_v4, %v89_v58 }
  0x95   :  { %1493 = vst [vmem:[#allocation7 + $0x130] sm:$0xff] %v1365_v63  ;;  %v1366_v12 = vadd.f32 %v2239_v10, %v1237_v0  ;;  %v1238_v14 = vadd.f32 %v1110_v1, %v596_v61  ;;  %v597_v15 = vmul.f32 %v1775_v3, %v2231_v5  ;;  %v391_v18 = vmul.f32 1.442695, %v217_v2 }
  0x96   :  { %v1777_v19 = vpop.eup %1776  ;;  %1792 = vpow2.f32 %v903_v8  ;;  %v905_v20 = vmul.f32 1.442695, %v731_v9  ;;  %v393_v16 = vmul.f32 1.442695, %v218_v11  ;;  %v732_v21 = vmul.f32 %v2233_v6, %v89_v58  ;;  %v95_v9 = vld [vmem:[#allocation6 + $0x1a8] sm:$0xff] }
  0x97   :  { %v1779_v17 = vpop.eup %1778  ;;  %1494 = vst [vmem:[#allocation7 + $0x138] sm:$0xff] %v1366_v12  ;;  %v1367_v22 = vadd.f32 %v2239_v10, %v1238_v14  ;;  %v1111_v23 = vmul.f32 %v1777_v19, %v2235_v7  ;;  %1794 = vpow2.f32 %v391_v18  ;;  %v219_v24 = vmul.f32 %v2229_v4, %v90_v13 }
  0x98   :  { %v1781_v26 = vpop.eup %1780  ;;  %v598_v27 = vmul.f32 %v1779_v17, %v2231_v5  ;;  %1796 = vpow2.f32 %v905_v20  ;;  %v907_v28 = vmul.f32 1.442695, %v732_v21  ;;  %v733_v30 = vmul.f32 %v2233_v6, %v90_v13 }
  0x99   :  { %v1783_v29 = vpop.eup %1782  ;;  %1495 = vst [vmem:[#allocation7 + $0x140] sm:$0xff] %v1367_v22  ;;  %v1239_v31 = vadd.f32 %v1111_v23, %v597_v15  ;;  %v1112_v32 = vmul.f32 %v1781_v26, %v2235_v7  ;;  %1798 = vpow2.f32 %v393_v16  ;;  %v395_v33 = vmul.f32 1.442695, %v219_v24  ;;  %v96_v23 = vld [vmem:[#allocation6 + $0x1b0] sm:$0xff] }
  0x9a   :  { %v1785_v34 = vpop.eup %1784  ;;  %v599_v35 = vmul.f32 %v1783_v29, %v2231_v5  ;;  %1800 = vpow2.f32 %v907_v28  ;;  %v909_v36 = vmul.f32 1.442695, %v733_v30  ;;  %v220_v37 = vmul.f32 %v2229_v4, %v91_v25  ;;  %v97_v28 = vld [vmem:[#allocation6 + $0x1b8] sm:$0xff] }
  0x9b   :  { %v1787_v39 = vpop.eup %1786  ;;  %v1368_v40 = vadd.f32 %v2239_v10, %v1239_v31  ;;  %v1240_v41 = vadd.f32 %v1112_v32, %v598_v27  ;;  %v1113_v42 = vmul.f32 %v1785_v34, %v2235_v7  ;;  %1802 = vpow2.f32 %v395_v33 }
  0x9c   :  { %v1789_v44 = vpop.eup %1788  ;;  %v600_v45 = vmul.f32 %v1787_v39, %v2231_v5  ;;  %1804 = vpow2.f32 %v909_v36  ;;  %v397_v46 = vmul.f32 1.442695, %v220_v37  ;;  %v734_v47 = vmul.f32 %v2233_v6, %v91_v25 }
  0x9d   :  { %1496 = vst [vmem:[#allocation7 + $0x148] sm:$0xff] %v1368_v40  ;;  %v1369_v48 = vadd.f32 %v2239_v10, %v1240_v41  ;;  %v1241_v49 = vadd.f32 %v1113_v42, %v599_v35  ;;  %v1114_v50 = vmul.f32 %v1789_v44, %v2235_v7  ;;  %v221_v51 = vmul.f32 %v2229_v4, %v92_v38  ;;  %v98_v41 = vld [vmem:[#allocation6 + $0x1c0] sm:$0xff] }
  0x9e   :  { %v1791_v52 = vpop.eup %1790  ;;  %1806 = vpow2.f32 %v397_v46  ;;  %v911_v53 = vmul.f32 1.442695, %v734_v47  ;;  %v735_v54 = vmul.f32 %v2233_v6, %v92_v38  ;;  %v222_v55 = vmul.f32 %v2229_v4, %v93_v43 }
  0x9f   :  { %1497 = vst [vmem:[#allocation7 + $0x150] sm:$0xff] %v1369_v48  ;;  %v1370_v57 = vadd.f32 %v2239_v10, %v1241_v49  ;;  %v1242_v58 = vadd.f32 %v1114_v50, %v600_v45  ;;  %v601_v59 = vmul.f32 %v1791_v52, %v2231_v5  ;;  %v399_v61 = vmul.f32 1.442695, %v221_v51 }
  0xa0   :  { %v1793_v62 = vpop.eup %1792  ;;  %1808 = vpow2.f32 %v911_v53  ;;  %v913_v60 = vmul.f32 1.442695, %v735_v54  ;;  %v401_v63 = vmul.f32 1.442695, %v222_v55  ;;  %v736_v0 = vmul.f32 %v2233_v6, %v93_v43  ;;  %v99_v54 = vld [vmem:[#allocation6 + $0x1c8] sm:$0xff] }
  0xa1   :  { %v1795_v1 = vpop.eup %1794  ;;  %1498 = vst [vmem:[#allocation7 + $0x158] sm:$0xff] %v1370_v57  ;;  %v1371_v2 = vadd.f32 %v2239_v10, %v1242_v58  ;;  %v1115_v3 = vmul.f32 %v1793_v62, %v2235_v7  ;;  %1810 = vpow2.f32 %v399_v61  ;;  %v223_v8 = vmul.f32 %v2229_v4, %v94_v56 }
  0xa2   :  { %v1797_v11 = vpop.eup %1796  ;;  %v602_v13 = vmul.f32 %v1795_v1, %v2231_v5  ;;  %1812 = vpow2.f32 %v913_v60  ;;  %v915_v12 = vmul.f32 1.442695, %v736_v0  ;;  %v737_v14 = vmul.f32 %v2233_v6, %v94_v56 }
  0xa3   :  { %v1799_v15 = vpop.eup %1798  ;;  %1499 = vst [vmem:[#allocation7 + $0x160] sm:$0xff] %v1371_v2  ;;  %v1243_v18 = vadd.f32 %v1115_v3, %v601_v59  ;;  %v1116_v19 = vmul.f32 %v1797_v11, %v2235_v7  ;;  %1814 = vpow2.f32 %v401_v63  ;;  %v403_v20 = vmul.f32 1.442695, %v223_v8  ;;  %v100_v3 = vld [vmem:[#allocation6 + $0x1d0] sm:$0xff] }
  0xa4   :  { %v1801_v16 = vpop.eup %1800  ;;  %v603_v21 = vmul.f32 %v1799_v15, %v2231_v5  ;;  %1816 = vpow2.f32 %v915_v12  ;;  %v917_v17 = vmul.f32 1.442695, %v737_v14  ;;  %v224_v22 = vmul.f32 %v2229_v4, %v95_v9  ;;  %v101_v12 = vld [vmem:[#allocation6 + $0x1d8] sm:$0xff] }
  0xa5   :  { %v1803_v24 = vpop.eup %1802  ;;  %v1372_v25 = vadd.f32 %v2239_v10, %v1243_v18  ;;  %v1244_v26 = vadd.f32 %v1116_v19, %v602_v13  ;;  %v1117_v27 = vmul.f32 %v1801_v16, %v2235_v7  ;;  %1818 = vpow2.f32 %v403_v20 }
  0xa6   :  { %v1805_v30 = vpop.eup %1804  ;;  %v604_v29 = vmul.f32 %v1803_v24, %v2231_v5  ;;  %1820 = vpow2.f32 %v917_v17  ;;  %v405_v31 = vmul.f32 1.442695, %v224_v22  ;;  %v738_v32 = vmul.f32 %v2233_v6, %v95_v9 }
  0xa7   :  { %1500 = vst [vmem:[#allocation7 + $0x168] sm:$0xff] %v1372_v25  ;;  %v1373_v33 = vadd.f32 %v2239_v10, %v1244_v26  ;;  %v1245_v34 = vadd.f32 %v1117_v27, %v603_v21  ;;  %v1118_v35 = vmul.f32 %v1805_v30, %v2235_v7  ;;  %v225_v36 = vmul.f32 %v2229_v4, %v96_v23  ;;  %v102_v26 = vld [vmem:[#allocation6 + $0x1e0] sm:$0xff] }
  0xa8   :  { %v1807_v37 = vpop.eup %1806  ;;  %1822 = vpow2.f32 %v405_v31  ;;  %v919_v38 = vmul.f32 1.442695, %v738_v32  ;;  %v739_v39 = vmul.f32 %v2233_v6, %v96_v23  ;;  %v226_v40 = vmul.f32 %v2229_v4, %v97_v28 }
  0xa9   :  { %1501 = vst [vmem:[#allocation7 + $0x170] sm:$0xff] %v1373_v33  ;;  %v1374_v42 = vadd.f32 %v2239_v10, %v1245_v34  ;;  %v1246_v43 = vadd.f32 %v1118_v35, %v604_v29  ;;  %v605_v44 = vmul.f32 %v1807_v37, %v2231_v5  ;;  %v407_v45 = vmul.f32 1.442695, %v225_v36 }
  0xaa   :  { %v1809_v46 = vpop.eup %1808  ;;  %1824 = vpow2.f32 %v919_v38  ;;  %v921_v47 = vmul.f32 1.442695, %v739_v39  ;;  %v409_v48 = vmul.f32 1.442695, %v226_v40  ;;  %v740_v49 = vmul.f32 %v2233_v6, %v97_v28  ;;  %v103_v39 = vld [vmem:[#allocation6 + $0x1e8] sm:$0xff] }
  0xab   :  { %v1811_v50 = vpop.eup %1810  ;;  %1502 = vst [vmem:[#allocation7 + $0x178] sm:$0xff] %v1374_v42  ;;  %v1375_v51 = vadd.f32 %v2239_v10, %v1246_v43  ;;  %v1119_v52 = vmul.f32 %v1809_v46, %v2235_v7  ;;  %1826 = vpow2.f32 %v407_v45  ;;  %v227_v53 = vmul.f32 %v2229_v4, %v98_v41 }
  0xac   :  { %v1813_v55 = vpop.eup %1812  ;;  %v606_v56 = vmul.f32 %v1811_v50, %v2231_v5  ;;  %1828 = vpow2.f32 %v921_v47  ;;  %v923_v57 = vmul.f32 1.442695, %v740_v49  ;;  %v741_v58 = vmul.f32 %v2233_v6, %v98_v41 }
  0xad   :  { %v1815_v59 = vpop.eup %1814  ;;  %1503 = vst [vmem:[#allocation7 + $0x180] sm:$0xff] %v1375_v51  ;;  %v1247_v61 = vadd.f32 %v1119_v52, %v605_v44  ;;  %v1120_v62 = vmul.f32 %v1813_v55, %v2235_v7  ;;  %1830 = vpow2.f32 %v409_v48  ;;  %v411_v60 = vmul.f32 1.442695, %v227_v53  ;;  %v104_v52 = vld [vmem:[#allocation6 + $0x1f0] sm:$0xff] }
  0xae   :  { %v1817_v63 = vpop.eup %1816  ;;  %v607_v0 = vmul.f32 %v1815_v59, %v2231_v5  ;;  %1832 = vpow2.f32 %v923_v57  ;;  %v925_v1 = vmul.f32 1.442695, %v741_v58  ;;  %v228_v2 = vmul.f32 %v2229_v4, %v99_v54  ;;  %v105_v57 = vld [vmem:[#allocation6 + $0x1f8] sm:$0xff] }
  0xaf   :  { %v1819_v8 = vpop.eup %1818  ;;  %v1376_v9 = vadd.f32 %v2239_v10, %v1247_v61  ;;  %v1248_v11 = vadd.f32 %v1120_v62, %v606_v56  ;;  %v1121_v13 = vmul.f32 %v1817_v63, %v2235_v7  ;;  %1834 = vpow2.f32 %v411_v60 }
  0xb0   :  { %v1821_v14 = vpop.eup %1820  ;;  %v608_v15 = vmul.f32 %v1819_v8, %v2231_v5  ;;  %1836 = vpow2.f32 %v925_v1  ;;  %v413_v18 = vmul.f32 1.442695, %v228_v2  ;;  %v742_v19 = vmul.f32 %v2233_v6, %v99_v54 }
  0xb1   :  { %1504 = vst [vmem:[#allocation7 + $0x188] sm:$0xff] %v1376_v9  ;;  %v1377_v20 = vadd.f32 %v2239_v10, %v1248_v11  ;;  %v1249_v16 = vadd.f32 %v1121_v13, %v607_v0  ;;  %v1122_v21 = vmul.f32 %v1821_v14, %v2235_v7  ;;  %v229_v17 = vmul.f32 %v2229_v4, %v100_v3  ;;  %v106_v11 = vld [vmem:[#allocation6 + $0x200] sm:$0xff] }
  0xb2   :  { %v1823_v22 = vpop.eup %1822  ;;  %1838 = vpow2.f32 %v413_v18  ;;  %v927_v23 = vmul.f32 1.442695, %v742_v19  ;;  %v743_v24 = vmul.f32 %v2233_v6, %v100_v3  ;;  %v230_v25 = vmul.f32 %v2229_v4, %v101_v12 }
  0xb3   :  { %1505 = vst [vmem:[#allocation7 + $0x190] sm:$0xff] %v1377_v20  ;;  %v1378_v27 = vadd.f32 %v2239_v10, %v1249_v16  ;;  %v1250_v28 = vadd.f32 %v1122_v21, %v608_v15  ;;  %v609_v30 = vmul.f32 %v1823_v22, %v2231_v5  ;;  %v415_v29 = vmul.f32 1.442695, %v229_v17 }
  0xb4   :  { %v1825_v31 = vpop.eup %1824  ;;  %1840 = vpow2.f32 %v927_v23  ;;  %v929_v32 = vmul.f32 1.442695, %v743_v24  ;;  %v417_v33 = vmul.f32 1.442695, %v230_v25  ;;  %v744_v34 = vmul.f32 %v2233_v6, %v101_v12  ;;  %v107_v24 = vld [vmem:[#allocation6 + $0x208] sm:$0xff] }
  0xb5   :  { %v1827_v35 = vpop.eup %1826  ;;  %1506 = vst [vmem:[#allocation7 + $0x198] sm:$0xff] %v1378_v27  ;;  %v1379_v36 = vadd.f32 %v2239_v10, %v1250_v28  ;;  %v1123_v37 = vmul.f32 %v1825_v31, %v2235_v7  ;;  %1842 = vpow2.f32 %v415_v29  ;;  %v231_v38 = vmul.f32 %v2229_v4, %v102_v26 }
  0xb6   :  { %v1829_v40 = vpop.eup %1828  ;;  %v610_v41 = vmul.f32 %v1827_v35, %v2231_v5  ;;  %1844 = vpow2.f32 %v929_v32  ;;  %v931_v42 = vmul.f32 1.442695, %v744_v34  ;;  %v745_v43 = vmul.f32 %v2233_v6, %v102_v26 }
  0xb7   :  { %v1831_v44 = vpop.eup %1830  ;;  %1507 = vst [vmem:[#allocation7 + $0x1a0] sm:$0xff] %v1379_v36  ;;  %v1251_v45 = vadd.f32 %v1123_v37, %v609_v30  ;;  %v1124_v46 = vmul.f32 %v1829_v40, %v2235_v7  ;;  %1846 = vpow2.f32 %v417_v33  ;;  %v419_v47 = vmul.f32 1.442695, %v231_v38  ;;  %v108_v37 = vld [vmem:[#allocation6 + $0x210] sm:$0xff] }
  0xb8   :  { %v1833_v48 = vpop.eup %1832  ;;  %v611_v49 = vmul.f32 %v1831_v44, %v2231_v5  ;;  %1848 = vpow2.f32 %v931_v42  ;;  %v933_v50 = vmul.f32 1.442695, %v745_v43  ;;  %v232_v51 = vmul.f32 %v2229_v4, %v103_v39  ;;  %v109_v42 = vld [vmem:[#allocation6 + $0x218] sm:$0xff] }
  0xb9   :  { %v1835_v53 = vpop.eup %1834  ;;  %v1380_v54 = vadd.f32 %v2239_v10, %v1251_v45  ;;  %v1252_v55 = vadd.f32 %v1124_v46, %v610_v41  ;;  %v1125_v56 = vmul.f32 %v1833_v48, %v2235_v7  ;;  %1850 = vpow2.f32 %v419_v47 }
  0xba   :  { %v1837_v58 = vpop.eup %1836  ;;  %v612_v59 = vmul.f32 %v1835_v53, %v2231_v5  ;;  %1852 = vpow2.f32 %v933_v50  ;;  %v421_v61 = vmul.f32 1.442695, %v232_v51  ;;  %v746_v62 = vmul.f32 %v2233_v6, %v103_v39 }
  0xbb   :  { %1508 = vst [vmem:[#allocation7 + $0x1a8] sm:$0xff] %v1380_v54  ;;  %v1381_v60 = vadd.f32 %v2239_v10, %v1252_v55  ;;  %v1253_v63 = vadd.f32 %v1125_v56, %v611_v49  ;;  %v1126_v0 = vmul.f32 %v1837_v58, %v2235_v7  ;;  %v233_v1 = vmul.f32 %v2229_v4, %v104_v52  ;;  %v110_v55 = vld [vmem:[#allocation6 + $0x220] sm:$0xff] }
  0xbc   :  { %v1839_v2 = vpop.eup %1838  ;;  %1854 = vpow2.f32 %v421_v61  ;;  %v935_v3 = vmul.f32 1.442695, %v746_v62  ;;  %v747_v8 = vmul.f32 %v2233_v6, %v104_v52  ;;  %v234_v9 = vmul.f32 %v2229_v4, %v105_v57 }
  0xbd   :  { %1509 = vst [vmem:[#allocation7 + $0x1b0] sm:$0xff] %v1381_v60  ;;  %v1382_v13 = vadd.f32 %v2239_v10, %v1253_v63  ;;  %v1254_v12 = vadd.f32 %v1126_v0, %v612_v59  ;;  %v613_v14 = vmul.f32 %v1839_v2, %v2231_v5  ;;  %v423_v15 = vmul.f32 1.442695, %v233_v1 }
  0xbe   :  { %v1841_v18 = vpop.eup %1840  ;;  %1856 = vpow2.f32 %v935_v3  ;;  %v937_v19 = vmul.f32 1.442695, %v747_v8  ;;  %v425_v20 = vmul.f32 1.442695, %v234_v9  ;;  %v748_v16 = vmul.f32 %v2233_v6, %v105_v57  ;;  %v111_v8 = vld [vmem:[#allocation6 + $0x228] sm:$0xff] }
  0xbf   :  { %v1843_v21 = vpop.eup %1842  ;;  %1510 = vst [vmem:[#allocation7 + $0x1b8] sm:$0xff] %v1382_v13  ;;  %v1383_v17 = vadd.f32 %v2239_v10, %v1254_v12  ;;  %v1127_v22 = vmul.f32 %v1841_v18, %v2235_v7  ;;  %1858 = vpow2.f32 %v423_v15  ;;  %v235_v23 = vmul.f32 %v2229_v4, %v106_v11 }
  0xc0   :  { %v1845_v25 = vpop.eup %1844  ;;  %v614_v26 = vmul.f32 %v1843_v21, %v2231_v5  ;;  %1860 = vpow2.f32 %v937_v19  ;;  %v939_v27 = vmul.f32 1.442695, %v748_v16  ;;  %v749_v28 = vmul.f32 %v2233_v6, %v106_v11 }
  0xc1   :  { %v1847_v30 = vpop.eup %1846  ;;  %1511 = vst [vmem:[#allocation7 + $0x1c0] sm:$0xff] %v1383_v17  ;;  %v1255_v29 = vadd.f32 %v1127_v22, %v613_v14  ;;  %v1128_v31 = vmul.f32 %v1845_v25, %v2235_v7  ;;  %1862 = vpow2.f32 %v425_v20  ;;  %v427_v32 = vmul.f32 1.442695, %v235_v23  ;;  %v112_v22 = vld [vmem:[#allocation6 + $0x230] sm:$0xff] }
  0xc2   :  { %v1849_v33 = vpop.eup %1848  ;;  %v615_v34 = vmul.f32 %v1847_v30, %v2231_v5  ;;  %1864 = vpow2.f32 %v939_v27  ;;  %v941_v35 = vmul.f32 1.442695, %v749_v28  ;;  %v236_v36 = vmul.f32 %v2229_v4, %v107_v24  ;;  %v113_v27 = vld [vmem:[#allocation6 + $0x238] sm:$0xff] }
  0xc3   :  { %v1851_v38 = vpop.eup %1850  ;;  %v1384_v39 = vadd.f32 %v2239_v10, %v1255_v29  ;;  %v1256_v40 = vadd.f32 %v1128_v31, %v614_v26  ;;  %v1129_v41 = vmul.f32 %v1849_v33, %v2235_v7  ;;  %1866 = vpow2.f32 %v427_v32 }
  0xc4   :  { %v1853_v43 = vpop.eup %1852  ;;  %v616_v44 = vmul.f32 %v1851_v38, %v2231_v5  ;;  %1868 = vpow2.f32 %v941_v35  ;;  %v429_v45 = vmul.f32 1.442695, %v236_v36  ;;  %v750_v46 = vmul.f32 %v2233_v6, %v107_v24 }
  0xc5   :  { %1512 = vst [vmem:[#allocation7 + $0x1c8] sm:$0xff] %v1384_v39  ;;  %v1385_v47 = vadd.f32 %v2239_v10, %v1256_v40  ;;  %v1257_v48 = vadd.f32 %v1129_v41, %v615_v34  ;;  %v1130_v49 = vmul.f32 %v1853_v43, %v2235_v7  ;;  %v237_v50 = vmul.f32 %v2229_v4, %v108_v37  ;;  %v114_v40 = vld [vmem:[#allocation6 + $0x240] sm:$0xff] }
  0xc6   :  { %v1855_v51 = vpop.eup %1854  ;;  %1870 = vpow2.f32 %v429_v45  ;;  %v943_v52 = vmul.f32 1.442695, %v750_v46  ;;  %v751_v53 = vmul.f32 %v2233_v6, %v108_v37  ;;  %v238_v54 = vmul.f32 %v2229_v4, %v109_v42 }
  0xc7   :  { %1513 = vst [vmem:[#allocation7 + $0x1d0] sm:$0xff] %v1385_v47  ;;  %v1386_v56 = vadd.f32 %v2239_v10, %v1257_v48  ;;  %v1258_v57 = vadd.f32 %v1130_v49, %v616_v44  ;;  %v617_v58 = vmul.f32 %v1855_v51, %v2231_v5  ;;  %v431_v59 = vmul.f32 1.442695, %v237_v50 }
  0xc8   :  { %v1857_v61 = vpop.eup %1856  ;;  %1872 = vpow2.f32 %v943_v52  ;;  %v945_v62 = vmul.f32 1.442695, %v751_v53  ;;  %v433_v60 = vmul.f32 1.442695, %v238_v54  ;;  %v752_v63 = vmul.f32 %v2233_v6, %v109_v42  ;;  %v115_v53 = vld [vmem:[#allocation6 + $0x248] sm:$0xff] }
  0xc9   :  { %v1859_v0 = vpop.eup %1858  ;;  %1514 = vst [vmem:[#allocation7 + $0x1d8] sm:$0xff] %v1386_v56  ;;  %v1387_v1 = vadd.f32 %v2239_v10, %v1258_v57  ;;  %v1131_v2 = vmul.f32 %v1857_v61, %v2235_v7  ;;  %1874 = vpow2.f32 %v431_v59  ;;  %v239_v3 = vmul.f32 %v2229_v4, %v110_v55 }
  0xca   :  { %v1861_v9 = vpop.eup %1860  ;;  %v618_v11 = vmul.f32 %v1859_v0, %v2231_v5  ;;  %1876 = vpow2.f32 %v945_v62  ;;  %v947_v13 = vmul.f32 1.442695, %v752_v63  ;;  %v753_v12 = vmul.f32 %v2233_v6, %v110_v55 }
  0xcb   :  { %v1863_v14 = vpop.eup %1862  ;;  %1515 = vst [vmem:[#allocation7 + $0x1e0] sm:$0xff] %v1387_v1  ;;  %v1259_v15 = vadd.f32 %v1131_v2, %v617_v58  ;;  %v1132_v18 = vmul.f32 %v1861_v9, %v2235_v7  ;;  %1878 = vpow2.f32 %v433_v60  ;;  %v435_v19 = vmul.f32 1.442695, %v239_v3  ;;  %v116_v2 = vld [vmem:[#allocation6 + $0x250] sm:$0xff] }
  0xcc   :  { %v1865_v20 = vpop.eup %1864  ;;  %v619_v16 = vmul.f32 %v1863_v14, %v2231_v5  ;;  %1880 = vpow2.f32 %v947_v13  ;;  %v949_v21 = vmul.f32 1.442695, %v753_v12  ;;  %v240_v17 = vmul.f32 %v2229_v4, %v111_v8  ;;  %v117_v13 = vld [vmem:[#allocation6 + $0x258] sm:$0xff] }
  0xcd   :  { %v1867_v23 = vpop.eup %1866  ;;  %v1388_v24 = vadd.f32 %v2239_v10, %v1259_v15  ;;  %v1260_v25 = vadd.f32 %v1132_v18, %v618_v11  ;;  %v1133_v26 = vmul.f32 %v1865_v20, %v2235_v7  ;;  %1882 = vpow2.f32 %v435_v19 }
  0xce   :  { %v1869_v28 = vpop.eup %1868  ;;  %v620_v30 = vmul.f32 %v1867_v23, %v2231_v5  ;;  %1884 = vpow2.f32 %v949_v21  ;;  %v437_v29 = vmul.f32 1.442695, %v240_v17  ;;  %v754_v31 = vmul.f32 %v2233_v6, %v111_v8 }
  0xcf   :  { %1516 = vst [vmem:[#allocation7 + $0x1e8] sm:$0xff] %v1388_v24  ;;  %v1389_v32 = vadd.f32 %v2239_v10, %v1260_v25  ;;  %v1261_v33 = vadd.f32 %v1133_v26, %v619_v16  ;;  %v1134_v34 = vmul.f32 %v1869_v28, %v2235_v7  ;;  %v241_v35 = vmul.f32 %v2229_v4, %v112_v22  ;;  %v118_v25 = vld [vmem:[#allocation6 + $0x260] sm:$0xff] }
  0xd0   :  { %v1871_v36 = vpop.eup %1870  ;;  %1886 = vpow2.f32 %v437_v29  ;;  %v951_v37 = vmul.f32 1.442695, %v754_v31  ;;  %v755_v38 = vmul.f32 %v2233_v6, %v112_v22  ;;  %v242_v39 = vmul.f32 %v2229_v4, %v113_v27 }
  0xd1   :  { %1517 = vst [vmem:[#allocation7 + $0x1f0] sm:$0xff] %v1389_v32  ;;  %v1390_v41 = vadd.f32 %v2239_v10, %v1261_v33  ;;  %v1262_v42 = vadd.f32 %v1134_v34, %v620_v30  ;;  %v621_v43 = vmul.f32 %v1871_v36, %v2231_v5  ;;  %v439_v44 = vmul.f32 1.442695, %v241_v35 }
  0xd2   :  { %v1873_v45 = vpop.eup %1872  ;;  %1888 = vpow2.f32 %v951_v37  ;;  %v953_v46 = vmul.f32 1.442695, %v755_v38  ;;  %v441_v47 = vmul.f32 1.442695, %v242_v39  ;;  %v756_v48 = vmul.f32 %v2233_v6, %v113_v27  ;;  %v119_v38 = vld [vmem:[#allocation6 + $0x268] sm:$0xff] }
  0xd3   :  { %v1875_v49 = vpop.eup %1874  ;;  %1518 = vst [vmem:[#allocation7 + $0x1f8] sm:$0xff] %v1390_v41  ;;  %v1391_v50 = vadd.f32 %v2239_v10, %v1262_v42  ;;  %v1135_v51 = vmul.f32 %v1873_v45, %v2235_v7  ;;  %1890 = vpow2.f32 %v439_v44  ;;  %v243_v52 = vmul.f32 %v2229_v4, %v114_v40 }
  0xd4   :  { %v1877_v54 = vpop.eup %1876  ;;  %v622_v55 = vmul.f32 %v1875_v49, %v2231_v5  ;;  %1892 = vpow2.f32 %v953_v46  ;;  %v955_v56 = vmul.f32 1.442695, %v756_v48  ;;  %v757_v57 = vmul.f32 %v2233_v6, %v114_v40 }
  0xd5   :  { %v1879_v58 = vpop.eup %1878  ;;  %1519 = vst [vmem:[#allocation7 + $0x200] sm:$0xff] %v1391_v50  ;;  %v1263_v59 = vadd.f32 %v1135_v51, %v621_v43  ;;  %v1136_v61 = vmul.f32 %v1877_v54, %v2235_v7  ;;  %1894 = vpow2.f32 %v441_v47  ;;  %v443_v62 = vmul.f32 1.442695, %v243_v52  ;;  %v120_v51 = vld [vmem:[#allocation6 + $0x270] sm:$0xff] }
  0xd6   :  { %v1881_v60 = vpop.eup %1880  ;;  %v623_v63 = vmul.f32 %v1879_v58, %v2231_v5  ;;  %1896 = vpow2.f32 %v955_v56  ;;  %v957_v0 = vmul.f32 1.442695, %v757_v57  ;;  %v244_v1 = vmul.f32 %v2229_v4, %v115_v53  ;;  %v121_v56 = vld [vmem:[#allocation6 + $0x278] sm:$0xff] }
  0xd7   :  { %v1883_v3 = vpop.eup %1882  ;;  %v1392_v8 = vadd.f32 %v2239_v10, %v1263_v59  ;;  %v1264_v9 = vadd.f32 %v1136_v61, %v622_v55  ;;  %v1137_v11 = vmul.f32 %v1881_v60, %v2235_v7  ;;  %1898 = vpow2.f32 %v443_v62 }
  0xd8   :  { %v1885_v12 = vpop.eup %1884  ;;  %v624_v14 = vmul.f32 %v1883_v3, %v2231_v5  ;;  %1900 = vpow2.f32 %v957_v0  ;;  %v445_v15 = vmul.f32 1.442695, %v244_v1  ;;  %v758_v18 = vmul.f32 %v2233_v6, %v115_v53 }
  0xd9   :  { %1520 = vst [vmem:[#allocation7 + $0x208] sm:$0xff] %v1392_v8  ;;  %v1393_v19 = vadd.f32 %v2239_v10, %v1264_v9  ;;  %v1265_v20 = vadd.f32 %v1137_v11, %v623_v63  ;;  %v1138_v16 = vmul.f32 %v1885_v12, %v2235_v7  ;;  %v245_v21 = vmul.f32 %v2229_v4, %v116_v2  ;;  %v122_v9 = vld [vmem:[#allocation6 + $0x280] sm:$0xff] }
  0xda   :  { %v1887_v17 = vpop.eup %1886  ;;  %1902 = vpow2.f32 %v445_v15  ;;  %v959_v22 = vmul.f32 1.442695, %v758_v18  ;;  %v759_v23 = vmul.f32 %v2233_v6, %v116_v2  ;;  %v246_v24 = vmul.f32 %v2229_v4, %v117_v13 }
  0xdb   :  { %1521 = vst [vmem:[#allocation7 + $0x210] sm:$0xff] %v1393_v19  ;;  %v1394_v26 = vadd.f32 %v2239_v10, %v1265_v20  ;;  %v1266_v27 = vadd.f32 %v1138_v16, %v624_v14  ;;  %v625_v28 = vmul.f32 %v1887_v17, %v2231_v5  ;;  %v447_v30 = vmul.f32 1.442695, %v245_v21 }
  0xdc   :  { %v1889_v29 = vpop.eup %1888  ;;  %1904 = vpow2.f32 %v959_v22  ;;  %v961_v31 = vmul.f32 1.442695, %v759_v23  ;;  %v449_v32 = vmul.f32 1.442695, %v246_v24  ;;  %v760_v33 = vmul.f32 %v2233_v6, %v117_v13  ;;  %v123_v23 = vld [vmem:[#allocation6 + $0x288] sm:$0xff] }
  0xdd   :  { %v1891_v34 = vpop.eup %1890  ;;  %1522 = vst [vmem:[#allocation7 + $0x218] sm:$0xff] %v1394_v26  ;;  %v1395_v35 = vadd.f32 %v2239_v10, %v1266_v27  ;;  %v1139_v36 = vmul.f32 %v1889_v29, %v2235_v7  ;;  %1906 = vpow2.f32 %v447_v30  ;;  %v247_v37 = vmul.f32 %v2229_v4, %v118_v25 }
  0xde   :  { %v1893_v39 = vpop.eup %1892  ;;  %v626_v40 = vmul.f32 %v1891_v34, %v2231_v5  ;;  %1908 = vpow2.f32 %v961_v31  ;;  %v963_v41 = vmul.f32 1.442695, %v760_v33  ;;  %v761_v42 = vmul.f32 %v2233_v6, %v118_v25 }
  0xdf   :  { %v1895_v43 = vpop.eup %1894  ;;  %1523 = vst [vmem:[#allocation7 + $0x220] sm:$0xff] %v1395_v35  ;;  %v1267_v44 = vadd.f32 %v1139_v36, %v625_v28  ;;  %v1140_v45 = vmul.f32 %v1893_v39, %v2235_v7  ;;  %1910 = vpow2.f32 %v449_v32  ;;  %v451_v46 = vmul.f32 1.442695, %v247_v37  ;;  %v124_v36 = vld [vmem:[#allocation6 + $0x290] sm:$0xff] }
  0xe0   :  { %v1897_v47 = vpop.eup %1896  ;;  %v627_v48 = vmul.f32 %v1895_v43, %v2231_v5  ;;  %1912 = vpow2.f32 %v963_v41  ;;  %v965_v49 = vmul.f32 1.442695, %v761_v42  ;;  %v248_v50 = vmul.f32 %v2229_v4, %v119_v38  ;;  %v125_v41 = vld [vmem:[#allocation6 + $0x298] sm:$0xff] }
  0xe1   :  { %v1899_v52 = vpop.eup %1898  ;;  %v1396_v53 = vadd.f32 %v2239_v10, %v1267_v44  ;;  %v1268_v54 = vadd.f32 %v1140_v45, %v626_v40  ;;  %v1141_v55 = vmul.f32 %v1897_v47, %v2235_v7  ;;  %1914 = vpow2.f32 %v451_v46 }
  0xe2   :  { %v1901_v57 = vpop.eup %1900  ;;  %v628_v58 = vmul.f32 %v1899_v52, %v2231_v5  ;;  %1916 = vpow2.f32 %v965_v49  ;;  %v453_v59 = vmul.f32 1.442695, %v248_v50  ;;  %v762_v61 = vmul.f32 %v2233_v6, %v119_v38 }
  0xe3   :  { %1524 = vst [vmem:[#allocation7 + $0x228] sm:$0xff] %v1396_v53  ;;  %v1397_v62 = vadd.f32 %v2239_v10, %v1268_v54  ;;  %v1269_v60 = vadd.f32 %v1141_v55, %v627_v48  ;;  %v1142_v63 = vmul.f32 %v1901_v57, %v2235_v7  ;;  %v249_v0 = vmul.f32 %v2229_v4, %v120_v51  ;;  %v126_v54 = vld [vmem:[#allocation6 + $0x2a0] sm:$0xff] }
  0xe4   :  { %v1903_v1 = vpop.eup %1902  ;;  %1918 = vpow2.f32 %v453_v59  ;;  %v967_v2 = vmul.f32 1.442695, %v762_v61  ;;  %v763_v3 = vmul.f32 %v2233_v6, %v120_v51  ;;  %v250_v8 = vmul.f32 %v2229_v4, %v121_v56 }
  0xe5   :  { %1525 = vst [vmem:[#allocation7 + $0x230] sm:$0xff] %v1397_v62  ;;  %v1398_v11 = vadd.f32 %v2239_v10, %v1269_v60  ;;  %v1270_v13 = vadd.f32 %v1142_v63, %v628_v58  ;;  %v629_v12 = vmul.f32 %v1903_v1, %v2231_v5  ;;  %v455_v14 = vmul.f32 1.442695, %v249_v0 }
  0xe6   :  { %v1905_v15 = vpop.eup %1904  ;;  %1920 = vpow2.f32 %v967_v2  ;;  %v969_v18 = vmul.f32 1.442695, %v763_v3  ;;  %v457_v19 = vmul.f32 1.442695, %v250_v8  ;;  %v764_v20 = vmul.f32 %v2233_v6, %v121_v56  ;;  %v127_v3 = vld [vmem:[#allocation6 + $0x2a8] sm:$0xff] }
  0xe7   :  { %v1907_v16 = vpop.eup %1906  ;;  %1526 = vst [vmem:[#allocation7 + $0x238] sm:$0xff] %v1398_v11  ;;  %v1399_v21 = vadd.f32 %v2239_v10, %v1270_v13  ;;  %v1143_v17 = vmul.f32 %v1905_v15, %v2235_v7  ;;  %1922 = vpow2.f32 %v455_v14  ;;  %v251_v22 = vmul.f32 %v2229_v4, %v122_v9 }
  0xe8   :  { %v1909_v24 = vpop.eup %1908  ;;  %v630_v25 = vmul.f32 %v1907_v16, %v2231_v5  ;;  %1924 = vpow2.f32 %v969_v18  ;;  %v971_v26 = vmul.f32 1.442695, %v764_v20  ;;  %v765_v27 = vmul.f32 %v2233_v6, %v122_v9 }
  0xe9   :  { %v1911_v28 = vpop.eup %1910  ;;  %1527 = vst [vmem:[#allocation7 + $0x240] sm:$0xff] %v1399_v21  ;;  %v1271_v30 = vadd.f32 %v1143_v17, %v629_v12  ;;  %v1144_v29 = vmul.f32 %v1909_v24, %v2235_v7  ;;  %1926 = vpow2.f32 %v457_v19  ;;  %v459_v31 = vmul.f32 1.442695, %v251_v22  ;;  %v128_v17 = vld [vmem:[#allocation6 + $0x2b0] sm:$0xff] }
  0xea   :  { %v1913_v32 = vpop.eup %1912  ;;  %v631_v33 = vmul.f32 %v1911_v28, %v2231_v5  ;;  %1928 = vpow2.f32 %v971_v26  ;;  %v973_v34 = vmul.f32 1.442695, %v765_v27  ;;  %v252_v35 = vmul.f32 %v2229_v4, %v123_v23  ;;  %v129_v26 = vld [vmem:[#allocation6 + $0x2b8] sm:$0xff] }
  0xeb   :  { %v1915_v37 = vpop.eup %1914  ;;  %v1400_v38 = vadd.f32 %v2239_v10, %v1271_v30  ;;  %v1272_v39 = vadd.f32 %v1144_v29, %v630_v25  ;;  %v1145_v40 = vmul.f32 %v1913_v32, %v2235_v7  ;;  %1930 = vpow2.f32 %v459_v31 }
  0xec   :  { %v1917_v42 = vpop.eup %1916  ;;  %v632_v43 = vmul.f32 %v1915_v37, %v2231_v5  ;;  %1932 = vpow2.f32 %v973_v34  ;;  %v461_v44 = vmul.f32 1.442695, %v252_v35  ;;  %v766_v45 = vmul.f32 %v2233_v6, %v123_v23 }
  0xed   :  { %1528 = vst [vmem:[#allocation7 + $0x248] sm:$0xff] %v1400_v38  ;;  %v1401_v46 = vadd.f32 %v2239_v10, %v1272_v39  ;;  %v1273_v47 = vadd.f32 %v1145_v40, %v631_v33  ;;  %v1146_v48 = vmul.f32 %v1917_v42, %v2235_v7  ;;  %v253_v49 = vmul.f32 %v2229_v4, %v124_v36  ;;  %v130_v39 = vld [vmem:[#allocation6 + $0x2c0] sm:$0xff] }
  0xee   :  { %v1919_v50 = vpop.eup %1918  ;;  %1934 = vpow2.f32 %v461_v44  ;;  %v975_v51 = vmul.f32 1.442695, %v766_v45  ;;  %v767_v52 = vmul.f32 %v2233_v6, %v124_v36  ;;  %v254_v53 = vmul.f32 %v2229_v4, %v125_v41 }
  0xef   :  { %1529 = vst [vmem:[#allocation7 + $0x250] sm:$0xff] %v1401_v46  ;;  %v1402_v55 = vadd.f32 %v2239_v10, %v1273_v47  ;;  %v1274_v56 = vadd.f32 %v1146_v48, %v632_v43  ;;  %v633_v57 = vmul.f32 %v1919_v50, %v2231_v5  ;;  %v463_v58 = vmul.f32 1.442695, %v253_v49 }
  0xf0   :  { %v1921_v59 = vpop.eup %1920  ;;  %1936 = vpow2.f32 %v975_v51  ;;  %v977_v61 = vmul.f32 1.442695, %v767_v52  ;;  %v465_v62 = vmul.f32 1.442695, %v254_v53  ;;  %v768_v60 = vmul.f32 %v2233_v6, %v125_v41  ;;  %v131_v52 = vld [vmem:[#allocation6 + $0x2c8] sm:$0xff] }
  0xf1   :  { %v1923_v63 = vpop.eup %1922  ;;  %1530 = vst [vmem:[#allocation7 + $0x258] sm:$0xff] %v1402_v55  ;;  %v1403_v0 = vadd.f32 %v2239_v10, %v1274_v56  ;;  %v1147_v1 = vmul.f32 %v1921_v59, %v2235_v7  ;;  %1938 = vpow2.f32 %v463_v58  ;;  %v255_v2 = vmul.f32 %v2229_v4, %v126_v54 }
  0xf2   :  { %v1925_v8 = vpop.eup %1924  ;;  %v634_v9 = vmul.f32 %v1923_v63, %v2231_v5  ;;  %1940 = vpow2.f32 %v977_v61  ;;  %v979_v11 = vmul.f32 1.442695, %v768_v60  ;;  %v769_v13 = vmul.f32 %v2233_v6, %v126_v54 }
  0xf3   :  { %v1927_v12 = vpop.eup %1926  ;;  %1531 = vst [vmem:[#allocation7 + $0x260] sm:$0xff] %v1403_v0  ;;  %v1275_v14 = vadd.f32 %v1147_v1, %v633_v57  ;;  %v1148_v15 = vmul.f32 %v1925_v8, %v2235_v7  ;;  %1942 = vpow2.f32 %v465_v62  ;;  %v467_v18 = vmul.f32 1.442695, %v255_v2  ;;  %v132_v1 = vld [vmem:[#allocation6 + $0x2d0] sm:$0xff] }
  0xf4   :  { %v1929_v19 = vpop.eup %1928  ;;  %v635_v20 = vmul.f32 %v1927_v12, %v2231_v5  ;;  %1944 = vpow2.f32 %v979_v11  ;;  %v981_v16 = vmul.f32 1.442695, %v769_v13  ;;  %v256_v21 = vmul.f32 %v2229_v4, %v127_v3  ;;  %v133_v11 = vld [vmem:[#allocation6 + $0x2d8] sm:$0xff] }
  0xf5   :  { %v1931_v22 = vpop.eup %1930  ;;  %v1404_v23 = vadd.f32 %v2239_v10, %v1275_v14  ;;  %v1276_v24 = vadd.f32 %v1148_v15, %v634_v9  ;;  %v1149_v25 = vmul.f32 %v1929_v19, %v2235_v7  ;;  %1946 = vpow2.f32 %v467_v18 }
  0xf6   :  { %v1933_v27 = vpop.eup %1932  ;;  %v636_v28 = vmul.f32 %v1931_v22, %v2231_v5  ;;  %1948 = vpow2.f32 %v981_v16  ;;  %v469_v30 = vmul.f32 1.442695, %v256_v21  ;;  %v770_v29 = vmul.f32 %v2233_v6, %v127_v3 }
  0xf7   :  { %1532 = vst [vmem:[#allocation7 + $0x268] sm:$0xff] %v1404_v23  ;;  %v1405_v31 = vadd.f32 %v2239_v10, %v1276_v24  ;;  %v1277_v32 = vadd.f32 %v1149_v25, %v635_v20  ;;  %v1150_v33 = vmul.f32 %v1933_v27, %v2235_v7  ;;  %v257_v34 = vmul.f32 %v2229_v4, %v128_v17  ;;  %v134_v24 = vld [vmem:[#allocation6 + $0x2e0] sm:$0xff] }
  0xf8   :  { %v1935_v35 = vpop.eup %1934  ;;  %1950 = vpow2.f32 %v469_v30  ;;  %v983_v36 = vmul.f32 1.442695, %v770_v29  ;;  %v771_v37 = vmul.f32 %v2233_v6, %v128_v17  ;;  %v258_v38 = vmul.f32 %v2229_v4, %v129_v26 }
  0xf9   :  { %1533 = vst [vmem:[#allocation7 + $0x270] sm:$0xff] %v1405_v31  ;;  %v1406_v40 = vadd.f32 %v2239_v10, %v1277_v32  ;;  %v1278_v41 = vadd.f32 %v1150_v33, %v636_v28  ;;  %v637_v42 = vmul.f32 %v1935_v35, %v2231_v5  ;;  %v471_v43 = vmul.f32 1.442695, %v257_v34 }
  0xfa   :  { %v1937_v44 = vpop.eup %1936  ;;  %1952 = vpow2.f32 %v983_v36  ;;  %v985_v45 = vmul.f32 1.442695, %v771_v37  ;;  %v473_v46 = vmul.f32 1.442695, %v258_v38  ;;  %v772_v47 = vmul.f32 %v2233_v6, %v129_v26  ;;  %v135_v37 = vld [vmem:[#allocation6 + $0x2e8] sm:$0xff] }
  0xfb   :  { %v1939_v48 = vpop.eup %1938  ;;  %1534 = vst [vmem:[#allocation7 + $0x278] sm:$0xff] %v1406_v40  ;;  %v1407_v49 = vadd.f32 %v2239_v10, %v1278_v41  ;;  %v1151_v50 = vmul.f32 %v1937_v44, %v2235_v7  ;;  %1954 = vpow2.f32 %v471_v43  ;;  %v259_v51 = vmul.f32 %v2229_v4, %v130_v39 }
  0xfc   :  { %v1941_v53 = vpop.eup %1940  ;;  %v638_v54 = vmul.f32 %v1939_v48, %v2231_v5  ;;  %1956 = vpow2.f32 %v985_v45  ;;  %v987_v55 = vmul.f32 1.442695, %v772_v47  ;;  %v773_v56 = vmul.f32 %v2233_v6, %v130_v39 }
  0xfd   :  { %v1943_v57 = vpop.eup %1942  ;;  %1535 = vst [vmem:[#allocation7 + $0x280] sm:$0xff] %v1407_v49  ;;  %v1279_v58 = vadd.f32 %v1151_v50, %v637_v42  ;;  %v1152_v59 = vmul.f32 %v1941_v53, %v2235_v7  ;;  %1958 = vpow2.f32 %v473_v46  ;;  %v475_v61 = vmul.f32 1.442695, %v259_v51  ;;  %v136_v50 = vld [vmem:[#allocation6 + $0x2f0] sm:$0xff] }
  0xfe   :  { %v1945_v62 = vpop.eup %1944  ;;  %v639_v60 = vmul.f32 %v1943_v57, %v2231_v5  ;;  %1960 = vpow2.f32 %v987_v55  ;;  %v989_v63 = vmul.f32 1.442695, %v773_v56  ;;  %v260_v0 = vmul.f32 %v2229_v4, %v131_v52  ;;  %v137_v55 = vld [vmem:[#allocation6 + $0x2f8] sm:$0xff] }
  0xff   :  { %v1947_v2 = vpop.eup %1946  ;;  %v1408_v3 = vadd.f32 %v2239_v10, %v1279_v58  ;;  %v1280_v8 = vadd.f32 %v1152_v59, %v638_v54  ;;  %v1153_v9 = vmul.f32 %v1945_v62, %v2235_v7  ;;  %1962 = vpow2.f32 %v475_v61 }
 0x100   :  { %v1949_v13 = vpop.eup %1948  ;;  %v640_v12 = vmul.f32 %v1947_v2, %v2231_v5  ;;  %1964 = vpow2.f32 %v989_v63  ;;  %v477_v14 = vmul.f32 1.442695, %v260_v0  ;;  %v774_v15 = vmul.f32 %v2233_v6, %v131_v52 }
 0x101   :  { %1536 = vst [vmem:[#allocation7 + $0x288] sm:$0xff] %v1408_v3  ;;  %v1409_v18 = vadd.f32 %v2239_v10, %v1280_v8  ;;  %v1281_v19 = vadd.f32 %v1153_v9, %v639_v60  ;;  %v1154_v20 = vmul.f32 %v1949_v13, %v2235_v7  ;;  %v261_v16 = vmul.f32 %v2229_v4, %v132_v1  ;;  %v138_v8 = vld [vmem:[#allocation6 + $0x300] sm:$0xff] }
 0x102   :  { %v1951_v21 = vpop.eup %1950  ;;  %1966 = vpow2.f32 %v477_v14  ;;  %v991_v17 = vmul.f32 1.442695, %v774_v15  ;;  %v775_v22 = vmul.f32 %v2233_v6, %v132_v1  ;;  %v262_v23 = vmul.f32 %v2229_v4, %v133_v11 }
 0x103   :  { %1537 = vst [vmem:[#allocation7 + $0x290] sm:$0xff] %v1409_v18  ;;  %v1410_v25 = vadd.f32 %v2239_v10, %v1281_v19  ;;  %v1282_v26 = vadd.f32 %v1154_v20, %v640_v12  ;;  %v641_v27 = vmul.f32 %v1951_v21, %v2231_v5  ;;  %v479_v28 = vmul.f32 1.442695, %v261_v16 }
 0x104   :  { %v1953_v30 = vpop.eup %1952  ;;  %1968 = vpow2.f32 %v991_v17  ;;  %v993_v29 = vmul.f32 1.442695, %v775_v22  ;;  %v481_v31 = vmul.f32 1.442695, %v262_v23  ;;  %v776_v32 = vmul.f32 %v2233_v6, %v133_v11  ;;  %v139_v22 = vld [vmem:[#allocation6 + $0x308] sm:$0xff] }
 0x105   :  { %v1955_v33 = vpop.eup %1954  ;;  %1538 = vst [vmem:[#allocation7 + $0x298] sm:$0xff] %v1410_v25  ;;  %v1411_v34 = vadd.f32 %v2239_v10, %v1282_v26  ;;  %v1155_v35 = vmul.f32 %v1953_v30, %v2235_v7  ;;  %1970 = vpow2.f32 %v479_v28  ;;  %v263_v36 = vmul.f32 %v2229_v4, %v134_v24 }
 0x106   :  { %v1957_v38 = vpop.eup %1956  ;;  %v642_v39 = vmul.f32 %v1955_v33, %v2231_v5  ;;  %1972 = vpow2.f32 %v993_v29  ;;  %v995_v40 = vmul.f32 1.442695, %v776_v32  ;;  %v777_v41 = vmul.f32 %v2233_v6, %v134_v24 }
 0x107   :  { %v1959_v42 = vpop.eup %1958  ;;  %1539 = vst [vmem:[#allocation7 + $0x2a0] sm:$0xff] %v1411_v34  ;;  %v1283_v43 = vadd.f32 %v1155_v35, %v641_v27  ;;  %v1156_v44 = vmul.f32 %v1957_v38, %v2235_v7  ;;  %1974 = vpow2.f32 %v481_v31  ;;  %v483_v45 = vmul.f32 1.442695, %v263_v36  ;;  %v140_v35 = vld [vmem:[#allocation6 + $0x310] sm:$0xff] }
 0x108   :  { %v1961_v46 = vpop.eup %1960  ;;  %v643_v47 = vmul.f32 %v1959_v42, %v2231_v5  ;;  %1976 = vpow2.f32 %v995_v40  ;;  %v997_v48 = vmul.f32 1.442695, %v777_v41  ;;  %v264_v49 = vmul.f32 %v2229_v4, %v135_v37  ;;  %v141_v40 = vld [vmem:[#allocation6 + $0x318] sm:$0xff] }
 0x109   :  { %v1963_v51 = vpop.eup %1962  ;;  %v1412_v52 = vadd.f32 %v2239_v10, %v1283_v43  ;;  %v1284_v53 = vadd.f32 %v1156_v44, %v642_v39  ;;  %v1157_v54 = vmul.f32 %v1961_v46, %v2235_v7  ;;  %1978 = vpow2.f32 %v483_v45 }
 0x10a   :  { %v1965_v56 = vpop.eup %1964  ;;  %v644_v57 = vmul.f32 %v1963_v51, %v2231_v5  ;;  %1980 = vpow2.f32 %v997_v48  ;;  %v485_v58 = vmul.f32 1.442695, %v264_v49  ;;  %v778_v59 = vmul.f32 %v2233_v6, %v135_v37 }
 0x10b   :  { %1540 = vst [vmem:[#allocation7 + $0x2a8] sm:$0xff] %v1412_v52  ;;  %v1413_v61 = vadd.f32 %v2239_v10, %v1284_v53  ;;  %v1285_v62 = vadd.f32 %v1157_v54, %v643_v47  ;;  %v1158_v60 = vmul.f32 %v1965_v56, %v2235_v7  ;;  %v265_v63 = vmul.f32 %v2229_v4, %v136_v50  ;;  %v142_v53 = vld [vmem:[#allocation6 + $0x320] sm:$0xff] }
 0x10c   :  { %v1967_v0 = vpop.eup %1966  ;;  %1982 = vpow2.f32 %v485_v58  ;;  %v999_v1 = vmul.f32 1.442695, %v778_v59  ;;  %v779_v2 = vmul.f32 %v2233_v6, %v136_v50  ;;  %v266_v3 = vmul.f32 %v2229_v4, %v137_v55 }
 0x10d   :  { %1541 = vst [vmem:[#allocation7 + $0x2b0] sm:$0xff] %v1413_v61  ;;  %v1414_v9 = vadd.f32 %v2239_v10, %v1285_v62  ;;  %v1286_v11 = vadd.f32 %v1158_v60, %v644_v57  ;;  %v645_v13 = vmul.f32 %v1967_v0, %v2231_v5  ;;  %v487_v12 = vmul.f32 1.442695, %v265_v63 }
 0x10e   :  { %v1969_v14 = vpop.eup %1968  ;;  %1984 = vpow2.f32 %v999_v1  ;;  %v1001_v15 = vmul.f32 1.442695, %v779_v2  ;;  %v489_v18 = vmul.f32 1.442695, %v266_v3  ;;  %v780_v19 = vmul.f32 %v2233_v6, %v137_v55  ;;  %v143_v2 = vld [vmem:[#allocation6 + $0x328] sm:$0xff] }
 0x10f   :  { %v1971_v20 = vpop.eup %1970  ;;  %1542 = vst [vmem:[#allocation7 + $0x2b8] sm:$0xff] %v1414_v9  ;;  %v1415_v16 = vadd.f32 %v2239_v10, %v1286_v11  ;;  %v1159_v21 = vmul.f32 %v1969_v14, %v2235_v7  ;;  %1986 = vpow2.f32 %v487_v12  ;;  %v267_v17 = vmul.f32 %v2229_v4, %v138_v8 }
 0x110   :  { %v1973_v23 = vpop.eup %1972  ;;  %v646_v24 = vmul.f32 %v1971_v20, %v2231_v5  ;;  %1988 = vpow2.f32 %v1001_v15  ;;  %v1003_v25 = vmul.f32 1.442695, %v780_v19  ;;  %v781_v26 = vmul.f32 %v2233_v6, %v138_v8 }
 0x111   :  { %v1975_v27 = vpop.eup %1974  ;;  %1543 = vst [vmem:[#allocation7 + $0x2c0] sm:$0xff] %v1415_v16  ;;  %v1287_v28 = vadd.f32 %v1159_v21, %v645_v13  ;;  %v1160_v30 = vmul.f32 %v1973_v23, %v2235_v7  ;;  %1990 = vpow2.f32 %v489_v18  ;;  %v491_v29 = vmul.f32 1.442695, %v267_v17  ;;  %v144_v21 = vld [vmem:[#allocation6 + $0x330] sm:$0xff] }
 0x112   :  { %v1977_v31 = vpop.eup %1976  ;;  %v647_v32 = vmul.f32 %v1975_v27, %v2231_v5  ;;  %1992 = vpow2.f32 %v1003_v25  ;;  %v1005_v33 = vmul.f32 1.442695, %v781_v26  ;;  %v268_v34 = vmul.f32 %v2229_v4, %v139_v22  ;;  %v145_v25 = vld [vmem:[#allocation6 + $0x338] sm:$0xff] }
 0x113   :  { %v1979_v36 = vpop.eup %1978  ;;  %v1416_v37 = vadd.f32 %v2239_v10, %v1287_v28  ;;  %v1288_v38 = vadd.f32 %v1160_v30, %v646_v24  ;;  %v1161_v39 = vmul.f32 %v1977_v31, %v2235_v7  ;;  %1994 = vpow2.f32 %v491_v29 }
 0x114   :  { %v1981_v41 = vpop.eup %1980  ;;  %v648_v42 = vmul.f32 %v1979_v36, %v2231_v5  ;;  %1996 = vpow2.f32 %v1005_v33  ;;  %v493_v43 = vmul.f32 1.442695, %v268_v34  ;;  %v782_v44 = vmul.f32 %v2233_v6, %v139_v22 }
 0x115   :  { %1544 = vst [vmem:[#allocation7 + $0x2c8] sm:$0xff] %v1416_v37  ;;  %v1417_v45 = vadd.f32 %v2239_v10, %v1288_v38  ;;  %v1289_v46 = vadd.f32 %v1161_v39, %v647_v32  ;;  %v1162_v47 = vmul.f32 %v1981_v41, %v2235_v7  ;;  %v269_v48 = vmul.f32 %v2229_v4, %v140_v35  ;;  %v146_v38 = vld [vmem:[#allocation6 + $0x340] sm:$0xff] }
 0x116   :  { %v1983_v49 = vpop.eup %1982  ;;  %1998 = vpow2.f32 %v493_v43  ;;  %v1007_v50 = vmul.f32 1.442695, %v782_v44  ;;  %v783_v51 = vmul.f32 %v2233_v6, %v140_v35  ;;  %v270_v52 = vmul.f32 %v2229_v4, %v141_v40 }
 0x117   :  { %1545 = vst [vmem:[#allocation7 + $0x2d0] sm:$0xff] %v1417_v45  ;;  %v1418_v54 = vadd.f32 %v2239_v10, %v1289_v46  ;;  %v1290_v55 = vadd.f32 %v1162_v47, %v648_v42  ;;  %v649_v56 = vmul.f32 %v1983_v49, %v2231_v5  ;;  %v495_v57 = vmul.f32 1.442695, %v269_v48 }
 0x118   :  { %v1985_v58 = vpop.eup %1984  ;;  %2000 = vpow2.f32 %v1007_v50  ;;  %v1009_v59 = vmul.f32 1.442695, %v783_v51  ;;  %v497_v61 = vmul.f32 1.442695, %v270_v52  ;;  %v784_v62 = vmul.f32 %v2233_v6, %v141_v40  ;;  %v147_v51 = vld [vmem:[#allocation6 + $0x348] sm:$0xff] }
 0x119   :  { %v1987_v60 = vpop.eup %1986  ;;  %1546 = vst [vmem:[#allocation7 + $0x2d8] sm:$0xff] %v1418_v54  ;;  %v1419_v63 = vadd.f32 %v2239_v10, %v1290_v55  ;;  %v1163_v0 = vmul.f32 %v1985_v58, %v2235_v7  ;;  %2002 = vpow2.f32 %v495_v57  ;;  %v271_v1 = vmul.f32 %v2229_v4, %v142_v53 }
 0x11a   :  { %v1989_v3 = vpop.eup %1988  ;;  %v650_v8 = vmul.f32 %v1987_v60, %v2231_v5  ;;  %2004 = vpow2.f32 %v1009_v59  ;;  %v1011_v9 = vmul.f32 1.442695, %v784_v62  ;;  %v785_v11 = vmul.f32 %v2233_v6, %v142_v53 }
 0x11b   :  { %v1991_v13 = vpop.eup %1990  ;;  %1547 = vst [vmem:[#allocation7 + $0x2e0] sm:$0xff] %v1419_v63  ;;  %v1291_v12 = vadd.f32 %v1163_v0, %v649_v56  ;;  %v1164_v14 = vmul.f32 %v1989_v3, %v2235_v7  ;;  %2006 = vpow2.f32 %v497_v61  ;;  %v499_v15 = vmul.f32 1.442695, %v271_v1  ;;  %v148_v0 = vld [vmem:[#allocation6 + $0x350] sm:$0xff] }
 0x11c   :  { %v1993_v18 = vpop.eup %1992  ;;  %v651_v19 = vmul.f32 %v1991_v13, %v2231_v5  ;;  %2008 = vpow2.f32 %v1011_v9  ;;  %v1013_v20 = vmul.f32 1.442695, %v785_v11  ;;  %v272_v16 = vmul.f32 %v2229_v4, %v143_v2  ;;  %v149_v9 = vld [vmem:[#allocation6 + $0x358] sm:$0xff] }
 0x11d   :  { %v1995_v17 = vpop.eup %1994  ;;  %v1420_v22 = vadd.f32 %v2239_v10, %v1291_v12  ;;  %v1292_v23 = vadd.f32 %v1164_v14, %v650_v8  ;;  %v1165_v24 = vmul.f32 %v1993_v18, %v2235_v7  ;;  %2010 = vpow2.f32 %v499_v15 }
 0x11e   :  { %v1997_v26 = vpop.eup %1996  ;;  %v652_v27 = vmul.f32 %v1995_v17, %v2231_v5  ;;  %2012 = vpow2.f32 %v1013_v20  ;;  %v501_v28 = vmul.f32 1.442695, %v272_v16  ;;  %v786_v30 = vmul.f32 %v2233_v6, %v143_v2 }
 0x11f   :  { %1548 = vst [vmem:[#allocation7 + $0x2e8] sm:$0xff] %v1420_v22  ;;  %v1421_v29 = vadd.f32 %v2239_v10, %v1292_v23  ;;  %v1293_v31 = vadd.f32 %v1165_v24, %v651_v19  ;;  %v1166_v32 = vmul.f32 %v1997_v26, %v2235_v7  ;;  %v273_v33 = vmul.f32 %v2229_v4, %v144_v21  ;;  %v150_v23 = vld [vmem:[#allocation6 + $0x360] sm:$0xff] }
 0x120   :  { %v1999_v34 = vpop.eup %1998  ;;  %2014 = vpow2.f32 %v501_v28  ;;  %v1015_v35 = vmul.f32 1.442695, %v786_v30  ;;  %v787_v36 = vmul.f32 %v2233_v6, %v144_v21  ;;  %v274_v37 = vmul.f32 %v2229_v4, %v145_v25 }
 0x121   :  { %1549 = vst [vmem:[#allocation7 + $0x2f0] sm:$0xff] %v1421_v29  ;;  %v1422_v39 = vadd.f32 %v2239_v10, %v1293_v31  ;;  %v1294_v40 = vadd.f32 %v1166_v32, %v652_v27  ;;  %v653_v41 = vmul.f32 %v1999_v34, %v2231_v5  ;;  %v503_v42 = vmul.f32 1.442695, %v273_v33 }
 0x122   :  { %v2001_v43 = vpop.eup %2000  ;;  %2016 = vpow2.f32 %v1015_v35  ;;  %v1017_v44 = vmul.f32 1.442695, %v787_v36  ;;  %v505_v45 = vmul.f32 1.442695, %v274_v37  ;;  %v788_v46 = vmul.f32 %v2233_v6, %v145_v25  ;;  %v151_v36 = vld [vmem:[#allocation6 + $0x368] sm:$0xff] }
 0x123   :  { %v2003_v47 = vpop.eup %2002  ;;  %1550 = vst [vmem:[#allocation7 + $0x2f8] sm:$0xff] %v1422_v39  ;;  %v1423_v48 = vadd.f32 %v2239_v10, %v1294_v40  ;;  %v1167_v49 = vmul.f32 %v2001_v43, %v2235_v7  ;;  %2018 = vpow2.f32 %v503_v42  ;;  %v275_v50 = vmul.f32 %v2229_v4, %v146_v38 }
 0x124   :  { %v2005_v52 = vpop.eup %2004  ;;  %v654_v53 = vmul.f32 %v2003_v47, %v2231_v5  ;;  %2020 = vpow2.f32 %v1017_v44  ;;  %v1019_v54 = vmul.f32 1.442695, %v788_v46  ;;  %v789_v55 = vmul.f32 %v2233_v6, %v146_v38 }
 0x125   :  { %v2007_v56 = vpop.eup %2006  ;;  %1551 = vst [vmem:[#allocation7 + $0x300] sm:$0xff] %v1423_v48  ;;  %v1295_v57 = vadd.f32 %v1167_v49, %v653_v41  ;;  %v1168_v58 = vmul.f32 %v2005_v52, %v2235_v7  ;;  %2022 = vpow2.f32 %v505_v45  ;;  %v507_v59 = vmul.f32 1.442695, %v275_v50  ;;  %v152_v49 = vld [vmem:[#allocation6 + $0x370] sm:$0xff] }
 0x126   :  { %v2009_v61 = vpop.eup %2008  ;;  %v655_v62 = vmul.f32 %v2007_v56, %v2231_v5  ;;  %2024 = vpow2.f32 %v1019_v54  ;;  %v1021_v60 = vmul.f32 1.442695, %v789_v55  ;;  %v276_v63 = vmul.f32 %v2229_v4, %v147_v51  ;;  %v153_v54 = vld [vmem:[#allocation6 + $0x378] sm:$0xff] }
 0x127   :  { %v2011_v1 = vpop.eup %2010  ;;  %v1424_v2 = vadd.f32 %v2239_v10, %v1295_v57  ;;  %v1296_v3 = vadd.f32 %v1168_v58, %v654_v53  ;;  %v1169_v8 = vmul.f32 %v2009_v61, %v2235_v7  ;;  %2026 = vpow2.f32 %v507_v59 }
 0x128   :  { %v2013_v11 = vpop.eup %2012  ;;  %v656_v13 = vmul.f32 %v2011_v1, %v2231_v5  ;;  %2028 = vpow2.f32 %v1021_v60  ;;  %v509_v12 = vmul.f32 1.442695, %v276_v63  ;;  %v790_v14 = vmul.f32 %v2233_v6, %v147_v51 }
 0x129   :  { %1552 = vst [vmem:[#allocation7 + $0x308] sm:$0xff] %v1424_v2  ;;  %v1425_v15 = vadd.f32 %v2239_v10, %v1296_v3  ;;  %v1297_v18 = vadd.f32 %v1169_v8, %v655_v62  ;;  %v1170_v19 = vmul.f32 %v2013_v11, %v2235_v7  ;;  %v277_v20 = vmul.f32 %v2229_v4, %v148_v0  ;;  %v154_v3 = vld [vmem:[#allocation6 + $0x380] sm:$0xff] }
 0x12a   :  { %v2015_v16 = vpop.eup %2014  ;;  %2030 = vpow2.f32 %v509_v12  ;;  %v1023_v21 = vmul.f32 1.442695, %v790_v14  ;;  %v791_v17 = vmul.f32 %v2233_v6, %v148_v0  ;;  %v278_v22 = vmul.f32 %v2229_v4, %v149_v9 }
 0x12b   :  { %1553 = vst [vmem:[#allocation7 + $0x310] sm:$0xff] %v1425_v15  ;;  %v1426_v24 = vadd.f32 %v2239_v10, %v1297_v18  ;;  %v1298_v25 = vadd.f32 %v1170_v19, %v656_v13  ;;  %v657_v26 = vmul.f32 %v2015_v16, %v2231_v5  ;;  %v511_v27 = vmul.f32 1.442695, %v277_v20 }
 0x12c   :  { %v2017_v28 = vpop.eup %2016  ;;  %2032 = vpow2.f32 %v1023_v21  ;;  %v1025_v30 = vmul.f32 1.442695, %v791_v17  ;;  %v513_v29 = vmul.f32 1.442695, %v278_v22  ;;  %v792_v31 = vmul.f32 %v2233_v6, %v149_v9  ;;  %v155_v17 = vld [vmem:[#allocation6 + $0x388] sm:$0xff] }
 0x12d   :  { %v2019_v32 = vpop.eup %2018  ;;  %1554 = vst [vmem:[#allocation7 + $0x318] sm:$0xff] %v1426_v24  ;;  %v1427_v33 = vadd.f32 %v2239_v10, %v1298_v25  ;;  %v1171_v34 = vmul.f32 %v2017_v28, %v2235_v7  ;;  %2034 = vpow2.f32 %v511_v27  ;;  %v279_v35 = vmul.f32 %v2229_v4, %v150_v23 }
 0x12e   :  { %v2021_v37 = vpop.eup %2020  ;;  %v658_v38 = vmul.f32 %v2019_v32, %v2231_v5  ;;  %2036 = vpow2.f32 %v1025_v30  ;;  %v1027_v39 = vmul.f32 1.442695, %v792_v31  ;;  %v793_v40 = vmul.f32 %v2233_v6, %v150_v23 }
 0x12f   :  { %v2023_v41 = vpop.eup %2022  ;;  %1555 = vst [vmem:[#allocation7 + $0x320] sm:$0xff] %v1427_v33  ;;  %v1299_v42 = vadd.f32 %v1171_v34, %v657_v26  ;;  %v1172_v43 = vmul.f32 %v2021_v37, %v2235_v7  ;;  %2038 = vpow2.f32 %v513_v29  ;;  %v515_v44 = vmul.f32 1.442695, %v279_v35  ;;  %v156_v34 = vld [vmem:[#allocation6 + $0x390] sm:$0xff] }
 0x130   :  { %v2025_v45 = vpop.eup %2024  ;;  %v659_v46 = vmul.f32 %v2023_v41, %v2231_v5  ;;  %2040 = vpow2.f32 %v1027_v39  ;;  %v1029_v47 = vmul.f32 1.442695, %v793_v40  ;;  %v280_v48 = vmul.f32 %v2229_v4, %v151_v36  ;;  %v157_v39 = vld [vmem:[#allocation6 + $0x398] sm:$0xff] }
 0x131   :  { %v2027_v50 = vpop.eup %2026  ;;  %v1428_v51 = vadd.f32 %v2239_v10, %v1299_v42  ;;  %v1300_v52 = vadd.f32 %v1172_v43, %v658_v38  ;;  %v1173_v53 = vmul.f32 %v2025_v45, %v2235_v7  ;;  %2042 = vpow2.f32 %v515_v44 }
 0x132   :  { %v2029_v55 = vpop.eup %2028  ;;  %v660_v56 = vmul.f32 %v2027_v50, %v2231_v5  ;;  %2044 = vpow2.f32 %v1029_v47  ;;  %v517_v57 = vmul.f32 1.442695, %v280_v48  ;;  %v794_v58 = vmul.f32 %v2233_v6, %v151_v36 }
 0x133   :  { %1556 = vst [vmem:[#allocation7 + $0x328] sm:$0xff] %v1428_v51  ;;  %v1429_v59 = vadd.f32 %v2239_v10, %v1300_v52  ;;  %v1301_v61 = vadd.f32 %v1173_v53, %v659_v46  ;;  %v1174_v62 = vmul.f32 %v2029_v55, %v2235_v7  ;;  %v281_v60 = vmul.f32 %v2229_v4, %v152_v49  ;;  %v158_v52 = vld [vmem:[#allocation6 + $0x3a0] sm:$0xff] }
 0x134   :  { %v2031_v63 = vpop.eup %2030  ;;  %2046 = vpow2.f32 %v517_v57  ;;  %v1031_v0 = vmul.f32 1.442695, %v794_v58  ;;  %v795_v1 = vmul.f32 %v2233_v6, %v152_v49  ;;  %v282_v2 = vmul.f32 %v2229_v4, %v153_v54 }
 0x135   :  { %1557 = vst [vmem:[#allocation7 + $0x330] sm:$0xff] %v1429_v59  ;;  %v1430_v8 = vadd.f32 %v2239_v10, %v1301_v61  ;;  %v1302_v9 = vadd.f32 %v1174_v62, %v660_v56  ;;  %v661_v11 = vmul.f32 %v2031_v63, %v2231_v5  ;;  %v519_v13 = vmul.f32 1.442695, %v281_v60 }
 0x136   :  { %v2033_v12 = vpop.eup %2032  ;;  %2048 = vpow2.f32 %v1031_v0  ;;  %v1033_v14 = vmul.f32 1.442695, %v795_v1  ;;  %v521_v15 = vmul.f32 1.442695, %v282_v2  ;;  %v796_v18 = vmul.f32 %v2233_v6, %v153_v54  ;;  %v159_v1 = vld [vmem:[#allocation6 + $0x3a8] sm:$0xff] }
 0x137   :  { %v2035_v19 = vpop.eup %2034  ;;  %1558 = vst [vmem:[#allocation7 + $0x338] sm:$0xff] %v1430_v8  ;;  %v1431_v20 = vadd.f32 %v2239_v10, %v1302_v9  ;;  %v1175_v16 = vmul.f32 %v2033_v12, %v2235_v7  ;;  %2050 = vpow2.f32 %v519_v13  ;;  %v283_v21 = vmul.f32 %v2229_v4, %v154_v3 }
 0x138   :  { %v2037_v22 = vpop.eup %2036  ;;  %v662_v23 = vmul.f32 %v2035_v19, %v2231_v5  ;;  %2052 = vpow2.f32 %v1033_v14  ;;  %v1035_v24 = vmul.f32 1.442695, %v796_v18  ;;  %v797_v25 = vmul.f32 %v2233_v6, %v154_v3 }
 0x139   :  { %v2039_v26 = vpop.eup %2038  ;;  %1559 = vst [vmem:[#allocation7 + $0x340] sm:$0xff] %v1431_v20  ;;  %v1303_v27 = vadd.f32 %v1175_v16, %v661_v11  ;;  %v1176_v28 = vmul.f32 %v2037_v22, %v2235_v7  ;;  %2054 = vpow2.f32 %v521_v15  ;;  %v523_v30 = vmul.f32 1.442695, %v283_v21  ;;  %v160_v16 = vld [vmem:[#allocation6 + $0x3b0] sm:$0xff] }
 0x13a   :  { %v2041_v29 = vpop.eup %2040  ;;  %v663_v31 = vmul.f32 %v2039_v26, %v2231_v5  ;;  %2056 = vpow2.f32 %v1035_v24  ;;  %v1037_v32 = vmul.f32 1.442695, %v797_v25  ;;  %v284_v33 = vmul.f32 %v2229_v4, %v155_v17  ;;  %v161_v24 = vld [vmem:[#allocation6 + $0x3b8] sm:$0xff] }
 0x13b   :  { %v2043_v35 = vpop.eup %2042  ;;  %v1432_v36 = vadd.f32 %v2239_v10, %v1303_v27  ;;  %v1304_v37 = vadd.f32 %v1176_v28, %v662_v23  ;;  %v1177_v38 = vmul.f32 %v2041_v29, %v2235_v7  ;;  %2058 = vpow2.f32 %v523_v30 }
 0x13c   :  { %v2045_v40 = vpop.eup %2044  ;;  %v664_v41 = vmul.f32 %v2043_v35, %v2231_v5  ;;  %2060 = vpow2.f32 %v1037_v32  ;;  %v525_v42 = vmul.f32 1.442695, %v284_v33  ;;  %v798_v43 = vmul.f32 %v2233_v6, %v155_v17 }
 0x13d   :  { %1560 = vst [vmem:[#allocation7 + $0x348] sm:$0xff] %v1432_v36  ;;  %v1433_v44 = vadd.f32 %v2239_v10, %v1304_v37  ;;  %v1305_v45 = vadd.f32 %v1177_v38, %v663_v31  ;;  %v1178_v46 = vmul.f32 %v2045_v40, %v2235_v7  ;;  %v285_v47 = vmul.f32 %v2229_v4, %v156_v34  ;;  %v162_v37 = vld [vmem:[#allocation6 + $0x3c0] sm:$0xff] }
 0x13e   :  { %v2047_v48 = vpop.eup %2046  ;;  %2062 = vpow2.f32 %v525_v42  ;;  %v1039_v49 = vmul.f32 1.442695, %v798_v43  ;;  %v799_v50 = vmul.f32 %v2233_v6, %v156_v34  ;;  %v286_v51 = vmul.f32 %v2229_v4, %v157_v39 }
 0x13f   :  { %1561 = vst [vmem:[#allocation7 + $0x350] sm:$0xff] %v1433_v44  ;;  %v1434_v53 = vadd.f32 %v2239_v10, %v1305_v45  ;;  %v1306_v54 = vadd.f32 %v1178_v46, %v664_v41  ;;  %v665_v55 = vmul.f32 %v2047_v48, %v2231_v5  ;;  %v527_v56 = vmul.f32 1.442695, %v285_v47 }
 0x140   :  { %v2049_v57 = vpop.eup %2048  ;;  %2064 = vpow2.f32 %v1039_v49  ;;  %v1041_v58 = vmul.f32 1.442695, %v799_v50  ;;  %v529_v59 = vmul.f32 1.442695, %v286_v51  ;;  %v800_v61 = vmul.f32 %v2233_v6, %v157_v39  ;;  %v163_v50 = vld [vmem:[#allocation6 + $0x3c8] sm:$0xff] }
 0x141   :  { %v2051_v62 = vpop.eup %2050  ;;  %1562 = vst [vmem:[#allocation7 + $0x358] sm:$0xff] %v1434_v53  ;;  %v1435_v60 = vadd.f32 %v2239_v10, %v1306_v54  ;;  %v1179_v63 = vmul.f32 %v2049_v57, %v2235_v7  ;;  %2066 = vpow2.f32 %v527_v56  ;;  %v287_v0 = vmul.f32 %v2229_v4, %v158_v52 }
 0x142   :  { %v2053_v2 = vpop.eup %2052  ;;  %v666_v3 = vmul.f32 %v2051_v62, %v2231_v5  ;;  %2068 = vpow2.f32 %v1041_v58  ;;  %v1043_v8 = vmul.f32 1.442695, %v800_v61  ;;  %v801_v9 = vmul.f32 %v2233_v6, %v158_v52 }
 0x143   :  { %v2055_v11 = vpop.eup %2054  ;;  %1563 = vst [vmem:[#allocation7 + $0x360] sm:$0xff] %v1435_v60  ;;  %v1307_v13 = vadd.f32 %v1179_v63, %v665_v55  ;;  %v1180_v12 = vmul.f32 %v2053_v2, %v2235_v7  ;;  %2070 = vpow2.f32 %v529_v59  ;;  %v531_v14 = vmul.f32 1.442695, %v287_v0  ;;  %v164_v63 = vld [vmem:[#allocation6 + $0x3d0] sm:$0xff] }
 0x144   :  { %v2057_v15 = vpop.eup %2056  ;;  %v667_v18 = vmul.f32 %v2055_v11, %v2231_v5  ;;  %2072 = vpow2.f32 %v1043_v8  ;;  %v1045_v19 = vmul.f32 1.442695, %v801_v9  ;;  %v288_v20 = vmul.f32 %v2229_v4, %v159_v1  ;;  %v165_v8 = vld [vmem:[#allocation6 + $0x3d8] sm:$0xff] }
 0x145   :  { %v2059_v21 = vpop.eup %2058  ;;  %v1436_v17 = vadd.f32 %v2239_v10, %v1307_v13  ;;  %v1308_v22 = vadd.f32 %v1180_v12, %v666_v3  ;;  %v1181_v23 = vmul.f32 %v2057_v15, %v2235_v7  ;;  %2074 = vpow2.f32 %v531_v14 }
 0x146   :  { %v2061_v25 = vpop.eup %2060  ;;  %v668_v26 = vmul.f32 %v2059_v21, %v2231_v5  ;;  %2076 = vpow2.f32 %v1045_v19  ;;  %v533_v27 = vmul.f32 1.442695, %v288_v20  ;;  %v802_v28 = vmul.f32 %v2233_v6, %v159_v1 }
 0x147   :  { %1564 = vst [vmem:[#allocation7 + $0x368] sm:$0xff] %v1436_v17  ;;  %v1437_v30 = vadd.f32 %v2239_v10, %v1308_v22  ;;  %v1309_v29 = vadd.f32 %v1181_v23, %v667_v18  ;;  %v1182_v31 = vmul.f32 %v2061_v25, %v2235_v7  ;;  %v289_v32 = vmul.f32 %v2229_v4, %v160_v16  ;;  %v166_v22 = vld [vmem:[#allocation6 + $0x3e0] sm:$0xff] }
 0x148   :  { %v2063_v33 = vpop.eup %2062  ;;  %2078 = vpow2.f32 %v533_v27  ;;  %v1047_v34 = vmul.f32 1.442695, %v802_v28  ;;  %v803_v35 = vmul.f32 %v2233_v6, %v160_v16  ;;  %v290_v36 = vmul.f32 %v2229_v4, %v161_v24 }
 0x149   :  { %1565 = vst [vmem:[#allocation7 + $0x370] sm:$0xff] %v1437_v30  ;;  %v1438_v38 = vadd.f32 %v2239_v10, %v1309_v29  ;;  %v1310_v39 = vadd.f32 %v1182_v31, %v668_v26  ;;  %v669_v40 = vmul.f32 %v2063_v33, %v2231_v5  ;;  %v535_v41 = vmul.f32 1.442695, %v289_v32 }
 0x14a   :  { %v2065_v42 = vpop.eup %2064  ;;  %2080 = vpow2.f32 %v1047_v34  ;;  %v1049_v43 = vmul.f32 1.442695, %v803_v35  ;;  %v537_v44 = vmul.f32 1.442695, %v290_v36  ;;  %v804_v45 = vmul.f32 %v2233_v6, %v161_v24  ;;  %v167_v35 = vld [vmem:[#allocation6 + $0x3e8] sm:$0xff] }
 0x14b   :  { %v2067_v46 = vpop.eup %2066  ;;  %1566 = vst [vmem:[#allocation7 + $0x378] sm:$0xff] %v1438_v38  ;;  %v1439_v47 = vadd.f32 %v2239_v10, %v1310_v39  ;;  %v1183_v48 = vmul.f32 %v2065_v42, %v2235_v7  ;;  %2082 = vpow2.f32 %v535_v41  ;;  %v291_v49 = vmul.f32 %v2229_v4, %v162_v37 }
 0x14c   :  { %v2069_v51 = vpop.eup %2068  ;;  %v670_v52 = vmul.f32 %v2067_v46, %v2231_v5  ;;  %2084 = vpow2.f32 %v1049_v43  ;;  %v1051_v53 = vmul.f32 1.442695, %v804_v45  ;;  %v805_v54 = vmul.f32 %v2233_v6, %v162_v37 }
 0x14d   :  { %v2071_v55 = vpop.eup %2070  ;;  %1567 = vst [vmem:[#allocation7 + $0x380] sm:$0xff] %v1439_v47  ;;  %v1311_v56 = vadd.f32 %v1183_v48, %v669_v40  ;;  %v1184_v57 = vmul.f32 %v2069_v51, %v2235_v7  ;;  %2086 = vpow2.f32 %v537_v44  ;;  %v539_v58 = vmul.f32 1.442695, %v291_v49  ;;  %v168_v48 = vld [vmem:[#allocation6 + $0x3f0] sm:$0xff] }
 0x14e   :  { %v2073_v59 = vpop.eup %2072  ;;  %v671_v61 = vmul.f32 %v2071_v55, %v2231_v5  ;;  %2088 = vpow2.f32 %v1051_v53  ;;  %v1053_v62 = vmul.f32 1.442695, %v805_v54  ;;  %v292_v60 = vmul.f32 %v2229_v4, %v163_v50  ;;  %v169_v53 = vld [vmem:[#allocation6 + $0x3f8] sm:$0xff] }
 0x14f   :  { %v2075_v0 = vpop.eup %2074  ;;  %v1440_v1 = vadd.f32 %v2239_v10, %v1311_v56  ;;  %v1312_v2 = vadd.f32 %v1184_v57, %v670_v52  ;;  %v1185_v3 = vmul.f32 %v2073_v59, %v2235_v7  ;;  %2090 = vpow2.f32 %v539_v58 }
 0x150   :  { %v2077_v9 = vpop.eup %2076  ;;  %v672_v11 = vmul.f32 %v2075_v0, %v2231_v5  ;;  %2092 = vpow2.f32 %v1053_v62  ;;  %v541_v13 = vmul.f32 1.442695, %v292_v60  ;;  %v806_v12 = vmul.f32 %v2233_v6, %v163_v50 }
 0x151   :  { %1568 = vst [vmem:[#allocation7 + $0x388] sm:$0xff] %v1440_v1  ;;  %v1441_v14 = vadd.f32 %v2239_v10, %v1312_v2  ;;  %v1313_v15 = vadd.f32 %v1185_v3, %v671_v61  ;;  %v1186_v18 = vmul.f32 %v2077_v9, %v2235_v7  ;;  %v293_v19 = vmul.f32 %v2229_v4, %v164_v63 }
 0x152   :  { %v2079_v20 = vpop.eup %2078  ;;  %2094 = vpow2.f32 %v541_v13  ;;  %v1055_v16 = vmul.f32 1.442695, %v806_v12  ;;  %v807_v21 = vmul.f32 %v2233_v6, %v164_v63  ;;  %v294_v17 = vmul.f32 %v2229_v4, %v165_v8 }
 0x153   :  { %1569 = vst [vmem:[#allocation7 + $0x390] sm:$0xff] %v1441_v14  ;;  %v1442_v23 = vadd.f32 %v2239_v10, %v1313_v15  ;;  %v1314_v24 = vadd.f32 %v1186_v18, %v672_v11  ;;  %v673_v25 = vmul.f32 %v2079_v20, %v2231_v5  ;;  %v543_v26 = vmul.f32 1.442695, %v293_v19 }
 0x154   :  { %v2081_v27 = vpop.eup %2080  ;;  %2096 = vpow2.f32 %v1055_v16  ;;  %v1057_v28 = vmul.f32 1.442695, %v807_v21  ;;  %v545_v30 = vmul.f32 1.442695, %v294_v17  ;;  %v808_v29 = vmul.f32 %v2233_v6, %v165_v8 }
 0x155   :  { %v2083_v31 = vpop.eup %2082  ;;  %1570 = vst [vmem:[#allocation7 + $0x398] sm:$0xff] %v1442_v23  ;;  %v1443_v32 = vadd.f32 %v2239_v10, %v1314_v24  ;;  %v1187_v33 = vmul.f32 %v2081_v27, %v2235_v7  ;;  %2098 = vpow2.f32 %v543_v26  ;;  %v295_v34 = vmul.f32 %v2229_v4, %v166_v22 }
 0x156   :  { %v2085_v36 = vpop.eup %2084  ;;  %v674_v37 = vmul.f32 %v2083_v31, %v2231_v5  ;;  %2100 = vpow2.f32 %v1057_v28  ;;  %v1059_v38 = vmul.f32 1.442695, %v808_v29  ;;  %v809_v39 = vmul.f32 %v2233_v6, %v166_v22 }
 0x157   :  { %v2087_v40 = vpop.eup %2086  ;;  %1571 = vst [vmem:[#allocation7 + $0x3a0] sm:$0xff] %v1443_v32  ;;  %v1315_v41 = vadd.f32 %v1187_v33, %v673_v25  ;;  %v1188_v42 = vmul.f32 %v2085_v36, %v2235_v7  ;;  %2102 = vpow2.f32 %v545_v30  ;;  %v547_v43 = vmul.f32 1.442695, %v295_v34 }
 0x158   :  { %v2089_v44 = vpop.eup %2088  ;;  %v675_v45 = vmul.f32 %v2087_v40, %v2231_v5  ;;  %2104 = vpow2.f32 %v1059_v38  ;;  %v1061_v46 = vmul.f32 1.442695, %v809_v39  ;;  %v296_v47 = vmul.f32 %v2229_v4, %v167_v35 }
 0x159   :  { %v2091_v49 = vpop.eup %2090  ;;  %v1444_v50 = vadd.f32 %v2239_v10, %v1315_v41  ;;  %v1316_v51 = vadd.f32 %v1188_v42, %v674_v37  ;;  %v1189_v52 = vmul.f32 %v2089_v44, %v2235_v7  ;;  %2106 = vpow2.f32 %v547_v43 }
 0x15a   :  { %v2093_v54 = vpop.eup %2092  ;;  %v676_v55 = vmul.f32 %v2091_v49, %v2231_v5  ;;  %2108 = vpow2.f32 %v1061_v46  ;;  %v549_v56 = vmul.f32 1.442695, %v296_v47  ;;  %v810_v57 = vmul.f32 %v2233_v6, %v167_v35 }
 0x15b   :  { %1572 = vst [vmem:[#allocation7 + $0x3a8] sm:$0xff] %v1444_v50  ;;  %v1445_v58 = vadd.f32 %v2239_v10, %v1316_v51  ;;  %v1317_v59 = vadd.f32 %v1189_v52, %v675_v45  ;;  %v1190_v61 = vmul.f32 %v2093_v54, %v2235_v7  ;;  %v297_v62 = vmul.f32 %v2229_v4, %v168_v48 }
 0x15c   :  { %v2095_v60 = vpop.eup %2094  ;;  %2110 = vpow2.f32 %v549_v56  ;;  %v1063_v63 = vmul.f32 1.442695, %v810_v57  ;;  %v811_v0 = vmul.f32 %v2233_v6, %v168_v48  ;;  %v298_v1 = vmul.f32 %v2229_v4, %v169_v53 }
 0x15d   :  { %1573 = vst [vmem:[#allocation7 + $0x3b0] sm:$0xff] %v1445_v58  ;;  %v1446_v2 = vadd.f32 %v2239_v10, %v1317_v59  ;;  %v1318_v3 = vadd.f32 %v1190_v61, %v676_v55  ;;  %v677_v8 = vmul.f32 %v2095_v60, %v2231_v5  ;;  %v551_v9 = vmul.f32 1.442695, %v297_v62 }
 0x15e   :  { %v2097_v11 = vpop.eup %2096  ;;  %2112 = vpow2.f32 %v1063_v63  ;;  %v1065_v13 = vmul.f32 1.442695, %v811_v0  ;;  %v553_v12 = vmul.f32 1.442695, %v298_v1  ;;  %v812_v14 = vmul.f32 %v2233_v6, %v169_v53 }
 0x15f   :  { %v2099_v15 = vpop.eup %2098  ;;  %1574 = vst [vmem:[#allocation7 + $0x3b8] sm:$0xff] %v1446_v2  ;;  %v1447_v18 = vadd.f32 %v2239_v10, %v1318_v3  ;;  %v1191_v19 = vmul.f32 %v2097_v11, %v2235_v7  ;;  %2114 = vpow2.f32 %v551_v9 }
 0x160   :  { %v2101_v4 = vpop.eup %2100  ;;  %v678_v20 = vmul.f32 %v2099_v15, %v2231_v5  ;;  %2116 = vpow2.f32 %v1065_v13  ;;  %v1067_v16 = vmul.f32 1.442695, %v812_v14 }
 0x161   :  { %v2103_v21 = vpop.eup %2102  ;;  %1575 = vst [vmem:[#allocation7 + $0x3c0] sm:$0xff] %v1447_v18  ;;  %v1319_v17 = vadd.f32 %v1191_v19, %v677_v8  ;;  %v1192_v22 = vmul.f32 %v2101_v4, %v2235_v7  ;;  %2118 = vpow2.f32 %v553_v12 }
 0x162   :  { %v2105_v23 = vpop.eup %2104  ;;  %v679_v6 = vmul.f32 %v2103_v21, %v2231_v5  ;;  %2120 = vpow2.f32 %v1067_v16 }
 0x163   :  { %v2107_v24 = vpop.eup %2106  ;;  %v1448_v25 = vadd.f32 %v2239_v10, %v1319_v17  ;;  %v1320_v26 = vadd.f32 %v1192_v22, %v678_v20  ;;  %v1193_v27 = vmul.f32 %v2105_v23, %v2235_v7 }
 0x164   :  { %v2109_v28 = vpop.eup %2108  ;;  %v680_v30 = vmul.f32 %v2107_v24, %v2231_v5 }
 0x165   :  { %1576 = vst [vmem:[#allocation7 + $0x3c8] sm:$0xff] %v1448_v25  ;;  %v1449_v29 = vadd.f32 %v2239_v10, %v1320_v26  ;;  %v1321_v31 = vadd.f32 %v1193_v27, %v679_v6  ;;  %v1194_v32 = vmul.f32 %v2109_v28, %v2235_v7 }
 0x166   :  { %v2111_v33 = vpop.eup %2110 }
 0x167   :  { %1577 = vst [vmem:[#allocation7 + $0x3d0] sm:$0xff] %v1449_v29  ;;  %v1450_v34 = vadd.f32 %v2239_v10, %v1321_v31  ;;  %v1322_v35 = vadd.f32 %v1194_v32, %v680_v30  ;;  %v681_v36 = vmul.f32 %v2111_v33, %v2231_v5 }
 0x168   :  { %v2113_v37 = vpop.eup %2112 }
 0x169   :  { %v2115_v38 = vpop.eup %2114  ;;  %1578 = vst [vmem:[#allocation7 + $0x3d8] sm:$0xff] %v1450_v34  ;;  %v1451_v39 = vadd.f32 %v2239_v10, %v1322_v35  ;;  %v1195_v40 = vmul.f32 %v2113_v37, %v2235_v7 }
 0x16a   :  { %v2117_v41 = vpop.eup %2116  ;;  %v682_v42 = vmul.f32 %v2115_v38, %v2231_v5 }
 0x16b   :  { %v2119_v43 = vpop.eup %2118  ;;  %1579 = vst [vmem:[#allocation7 + $0x3e0] sm:$0xff] %v1451_v39  ;;  %v1323_v44 = vadd.f32 %v1195_v40, %v681_v36  ;;  %v1196_v45 = vmul.f32 %v2117_v41, %v2235_v7 }
 0x16c   :  { %v2121_v46 = vpop.eup %2120  ;;  %v683_v47 = vmul.f32 %v2119_v43, %v2231_v5 }
 0x16d   :  { %v1452_v48 = vadd.f32 %v2239_v10, %v1323_v44  ;;  %v1324_v49 = vadd.f32 %v1196_v45, %v682_v42  ;;  %v1197_v50 = vmul.f32 %v2121_v46, %v2235_v7 }
 0x16f   :  { %1580 = vst [vmem:[#allocation7 + $0x3e8] sm:$0xff] %v1452_v48  ;;  %v1453_v51 = vadd.f32 %v2239_v10, %v1324_v49  ;;  %v1325_v52 = vadd.f32 %v1197_v50, %v683_v47 }
 0x171   :  { %1581 = vst [vmem:[#allocation7 + $0x3f0] sm:$0xff] %v1453_v51  ;;  %v1454_v53 = vadd.f32 %v2239_v10, %v1325_v52 }
 0x173   :  { %1582 = vst [vmem:[#allocation7 + $0x3f8] sm:$0xff] %v1454_v53 }
 0x174   :  { %2165 = shalt.err (!%p2162_p1)
}
 0x175   :  { %s2166_s13 = scalar_lea.hbm %s2914_s2, 16384 }
 0x176   :  { %p2167_p2 = scmp.ne.s32.totalorder %s2914_s2, %s2166_s13  ;;  %p2170_p3 = scmp.lt.u32.totalorder %s2166_s13, %s2914_s2 }
 0x178   :  { %p2172_p4 = pnand %p2170_p3, %p2167_p2 }
 0x17a   :  { %2175 = shalt.err (!%p2172_p4)
}
 0x17b   :  { %1594 = dma.vmem_to_hbm [thread:$0]  %s1589_s9, 16384, %s2914_s2, [#allocation4], %s2184_s0, %s2184_s0, %s2185_s29  }
 0x17c   :  { %2180 = dma.done.wait [#allocation4], 16384  }
 0x17d   :  { %2181 = vsyncadd [#allocation4], 4294950912 }
 0x17e   :  { %1598 = vsyncpa [#allocation3], 1 }
 0x17f   :  { %1599 = vsyncpa [#allocation4], 1 }
 0x180   :  { %1600 = vsyncpa [#allocation5], 1 }

</bundles_post_ra>
